<compile_context>
chip_gen: v7x
topology: tpu7x:2x2x1
jax: 0.10.0
libtpu: 0.0.40
codegen_flags: <defaults>
</compile_context>

<pallas_src>
import functools
import math

import jax
import jax.numpy as jnp
from jax.experimental import pallas as pl
from jax.experimental.pallas import tpu as pltpu


# ---------------------------------------------------------------------------
# Generation-aware tiling / VMEM budgets
# ---------------------------------------------------------------------------
def _vmem_capacity_bytes():
    try:
        info = pltpu.get_tpu_info()
        cap = getattr(info, "vmem_capacity_bytes", None)
        if cap:
            return int(cap)
    except Exception:
        pass
    return 0  # unknown -> fall through to the conservative (v7x) budget


_VMEM_CAP = _vmem_capacity_bytes()
if _VMEM_CAP >= 96 * 1024 * 1024:          # v5e / v6e: 128 MiB physical VMEM
    _VMEM_LIMIT = 96 * 1024 * 1024
    _ROW_TILE_TARGET = 512                  # bigger tiles -> closer to HBM roofline
    _FF_TILE_TARGET = 2048
    _ATTN_Q_TILE_TARGET = 256
else:                                       # v7x (64 MiB physical) or unknown
    _VMEM_LIMIT = 40 * 1024 * 1024
    _ROW_TILE_TARGET = 256
    _FF_TILE_TARGET = 1024
    _ATTN_Q_TILE_TARGET = 128


# ---------------------------------------------------------------------------
# Single-buffering support probe (pl.Buffered(1) for grid-invariant operands)
# ---------------------------------------------------------------------------
_SINGLE_BUFFER_OK = None


def _probe_single_buffering():
    try:
        def k(a_ref, o_ref):
            o_ref[...] = a_ref[...] + 1.0

        f = pl.pallas_call(
            k,
            out_shape=jax.ShapeDtypeStruct((16, 128), jnp.float32),
            grid=(2,),
            in_specs=[pl.BlockSpec((8, 128), lambda i: (0, 0),
                                   pipeline_mode=pl.Buffered(1))],
            out_specs=pl.BlockSpec((8, 128), lambda i: (i, 0)),
        )
        jax.block_until_ready(f(jnp.zeros((8, 128), jnp.float32)))
        return True
    except Exception:
        return False


def _single_buffer_ok():
    global _SINGLE_BUFFER_OK
    if _SINGLE_BUFFER_OK is None:
        _SINGLE_BUFFER_OK = _probe_single_buffering()
    return _SINGLE_BUFFER_OK


def _const_spec(shape, index_map):
    """BlockSpec for an operand whose block never changes across the grid."""
    if _single_buffer_ok():
        return pl.BlockSpec(shape, index_map, pipeline_mode=pl.Buffered(1))
    return pl.BlockSpec(shape, index_map)


# ---------------------------------------------------------------------------
# Tile-size helpers
# ---------------------------------------------------------------------------
def _choose_row_tile(m, target):
    """Return (tile, padded_rows): tile is a multiple of 8 dividing padded_rows."""
    target = max(8, (target // 8) * 8)
    if m <= target:
        if m % 8 == 0:
            return m, m
        mp = ((m + 7) // 8) * 8
        return mp, mp
    t = target
    while t >= 8:
        if m % t == 0:
            return t, m
        t -= 8
    mp = ((m + target - 1) // target) * target   # pad-and-mask path
    return target, mp


def _choose_ff_tile(d_ff, target):
    if d_ff <= target:
        return d_ff
    t = max(128, (target // 128) * 128)
    while t >= 128:
        if d_ff % t == 0:
            return t
        t -= 128
    return d_ff


def _choose_seq_tile(length, target):
    if length <= target:
        return length
    t = max(8, (target // 8) * 8)
    while t >= 8:
        if length % t == 0:
            return t
        t -= 8
    return length


def _pad_rows(x2d, rows):
    m = x2d.shape[0]
    if rows == m:
        return x2d
    pad = jnp.zeros((rows - m, x2d.shape[1]), x2d.dtype)
    return jnp.concatenate([x2d, pad], axis=0)


def _row_params():
    return pltpu.CompilerParams(
        dimension_semantics=("parallel",),
        vmem_limit_bytes=_VMEM_LIMIT,
    )


# ---------------------------------------------------------------------------
# Kernels
# ---------------------------------------------------------------------------
def _layernorm_f32(z, g, b, eps=1e-5):
    """Single-pass LayerNorm: var = E[z^2] - E[z]^2 (one elementwise pass saved)."""
    mu = jnp.mean(z, axis=-1, keepdims=True)
    m2 = jnp.mean(z * z, axis=-1, keepdims=True)
    var = m2 - mu * mu
    zn = (z - mu) * jax.lax.rsqrt(var + eps)
    return zn * g.astype(jnp.float32) + b.astype(jnp.float32)


def _qkv_kernel(x_ref, w_ref, b_ref, o_ref):
    """o = x @ W_qkv + b_qkv (fused q/k/v projection; f32 accumulation)."""
    acc = jnp.dot(x_ref[...], w_ref[...], preferred_element_type=jnp.float32)
    o_ref[...] = (acc + b_ref[...].astype(jnp.float32)).astype(o_ref.dtype)


def _attn_kernel(q_ref, kv_ref, ctx_ref, *opt_attn, n_heads, d_model):
    """Self-attention for one (batch, query-tile) grid step, all heads unrolled.

    q_ref : (1, tq, 3D) rows of the packed qkv (only the q lanes are read)
    kv_ref: (1, L, 3D)  full sequence (k/v lanes are read); block is constant
            across the query-tile axis so it is fetched once per batch element.
    Matmuls run in the input dtype (bf16 MXU path when given bf16) with f32
    accumulation; softmax statistics are f32; QK^T uses an NT dot_general so no
    explicit transpose of k is formed; the per-head contexts are concatenated
    and stored with a single lane-dense (tq, D) write.
    """
    attn_ref = opt_attn[0] if opt_attn else None
    dh = d_model // n_heads
    scale = 1.0 / math.sqrt(dh)
    ctx_parts = []
    for h in range(n_heads):                                  # static unroll
        q = q_ref[0, :, h * dh:(h + 1) * dh] * scale          # (tq, dh), input dtype
        k = kv_ref[0, :, d_model + h * dh:d_model + (h + 1) * dh]          # (L, dh)
        v = kv_ref[0, :, 2 * d_model + h * dh:2 * d_model + (h + 1) * dh]  # (L, dh)
        s = jax.lax.dot_general(q, k, (((1,), (1,)), ((), ())),
                                preferred_element_type=jnp.float32)        # (tq, L)
        s = s - jnp.max(s, axis=-1, keepdims=True)
        e = jnp.exp(s)
        # Exact reciprocal so returned probabilities match a PyTorch softmax.
        p = e * pl.reciprocal(jnp.sum(e, axis=-1, keepdims=True), approx=False)
        if attn_ref is not None:
            attn_ref[0, h] = p.astype(attn_ref.dtype)
        ctx_parts.append(jnp.dot(p.astype(v.dtype), v,
                                 preferred_element_type=jnp.float32))      # (tq, dh)
    ctx_ref[0] = jnp.concatenate(ctx_parts, axis=-1).astype(ctx_ref.dtype)


def _proj_add_ln_kernel(ctx_ref, w_ref, b_ref, res_ref, g_ref, beta_ref, o_ref):
    """o = LayerNorm(res + ctx @ Wo + bo)  (attention out-proj + residual + norm1)."""
    proj = jnp.dot(ctx_ref[...], w_ref[...], preferred_element_type=jnp.float32)
    z = res_ref[...].astype(jnp.float32) + proj + b_ref[...].astype(jnp.float32)
    o_ref[...] = _layernorm_f32(z, g_ref[...], beta_ref[...]).astype(o_ref.dtype)


def _ffn_add_ln_kernel(x_ref, w1_ref, b1_ref, w2_ref, b2_ref, g_ref, beta_ref,
                       o_ref, acc_ref):
    """o = LayerNorm(x + conv2(relu(conv1(x))))  with the d_ff axis tiled.

    Grid axis 1 walks d_ff chunks ("arbitrary"); the partial y contributions are
    accumulated into a (tm, D) f32 scratch, and the residual + LN epilogue runs
    on the last chunk.  ReLU is elementwise per d_ff column so chunking is exact.
    """
    j = pl.program_id(1)
    x = x_ref[...]

    @pl.when(j == 0)
    def _():
        acc_ref[...] = x.astype(jnp.float32) + b2_ref[...].astype(jnp.float32)

    h = jnp.dot(x, w1_ref[...], preferred_element_type=jnp.float32)
    h = jnp.maximum(h + b1_ref[...].astype(jnp.float32), 0.0)       # ReLU
    acc_ref[...] += jnp.dot(h.astype(w2_ref.dtype), w2_ref[...],
                            preferred_element_type=jnp.float32)

    @pl.when(j == pl.num_programs(1) - 1)
    def _():
        o_ref[...] = _layernorm_f32(acc_ref[...], g_ref[...],
                                    beta_ref[...]).astype(o_ref.dtype)


# ---------------------------------------------------------------------------
# Pallas wrappers
# ---------------------------------------------------------------------------
def qkv_projection(x2d, wqkv, bqkv):
    M, D = x2d.shape
    N = wqkv.shape[1]
    tm, Mp = _choose_row_tile(M, _ROW_TILE_TARGET)
    xp = _pad_rows(x2d, Mp)
    out = pl.pallas_call(
        _qkv_kernel,
        out_shape=jax.ShapeDtypeStruct((Mp, N), x2d.dtype),
        grid=(Mp // tm,),
        in_specs=[
            pl.BlockSpec((tm, D), lambda i: (i, 0)),
            _const_spec((D, N), lambda i: (0, 0)),      # weights VMEM-resident
            _const_spec((1, N), lambda i: (0, 0)),
        ],
        out_specs=pl.BlockSpec((tm, N), lambda i: (i, 0)),
        compiler_params=_row_params(),
    )(xp, wqkv, bqkv.reshape(1, N))
    return out[:M] if Mp != M else out


def attention(qkv, n_heads, out_dtype, output_attention=True):
    B, L, threeD = qkv.shape
    D = threeD // 3
    tq = _choose_seq_tile(L, _ATTN_Q_TILE_TARGET)
    kernel = functools.partial(_attn_kernel, n_heads=n_heads, d_model=D)

    ctx_shape = jax.ShapeDtypeStruct((B, L, D), out_dtype)
    ctx_spec = pl.BlockSpec((1, tq, D), lambda b, qi: (b, qi, 0))
    if output_attention:
        out_shape = (ctx_shape,
                     jax.ShapeDtypeStruct((B, n_heads, L, L), jnp.float32))
        out_specs = (ctx_spec,
                     pl.BlockSpec((1, n_heads, tq, L), lambda b, qi: (b, 0, qi, 0)))
    else:
        out_shape = ctx_shape
        out_specs = ctx_spec

    res = pl.pallas_call(
        kernel,
        out_shape=out_shape,
        grid=(B, L // tq),
        in_specs=[
            pl.BlockSpec((1, tq, threeD), lambda b, qi: (b, qi, 0)),   # q rows
            pl.BlockSpec((1, L, threeD), lambda b, qi: (b, 0, 0)),     # full k/v
        ],
        out_specs=out_specs,
        compiler_params=pltpu.CompilerParams(
            dimension_semantics=("parallel", "parallel"),
            vmem_limit_bytes=_VMEM_LIMIT,
        ),
    )(qkv, qkv)
    if output_attention:
        return res[0], res[1]
    return res, None


def proj_add_layernorm(ctx2d, wo, bo, res2d, gamma, beta):
    M, D = ctx2d.shape
    tm, Mp = _choose_row_tile(M, _ROW_TILE_TARGET)
    ctxp = _pad_rows(ctx2d, Mp)
    resp = _pad_rows(res2d, Mp)
    out = pl.pallas_call(
        _proj_add_ln_kernel,
        out_shape=jax.ShapeDtypeStruct((Mp, D), res2d.dtype),
        grid=(Mp // tm,),
        in_specs=[
            pl.BlockSpec((tm, D), lambda i: (i, 0)),
            _const_spec((D, D), lambda i: (0, 0)),
            _const_spec((1, D), lambda i: (0, 0)),
            pl.BlockSpec((tm, D), lambda i: (i, 0)),
            _const_spec((1, D), lambda i: (0, 0)),
            _const_spec((1, D), lambda i: (0, 0)),
        ],
        out_specs=pl.BlockSpec((tm, D), lambda i: (i, 0)),
        compiler_params=_row_params(),
    )(ctxp, wo, bo.reshape(1, D), resp, gamma.reshape(1, D), beta.reshape(1, D))
    return out[:M] if Mp != M else out


def ffn_add_layernorm(x2d, w1, b1, w2, b2, gamma, beta):
    M, D = x2d.shape
    d_ff = w1.shape[1]
    tm, Mp = _choose_row_tile(M, _ROW_TILE_TARGET)
    tf = _choose_ff_tile(d_ff, _FF_TILE_TARGET)
    xp = _pad_rows(x2d, Mp)
    out = pl.pallas_call(
        _ffn_add_ln_kernel,
        out_shape=jax.ShapeDtypeStruct((Mp, D), x2d.dtype),
        grid=(Mp // tm, d_ff // tf),
        in_specs=[
            pl.BlockSpec((tm, D), lambda i, j: (i, 0)),
            pl.BlockSpec((D, tf), lambda i, j: (0, j)),
            pl.BlockSpec((1, tf), lambda i, j: (0, j)),
            pl.BlockSpec((tf, D), lambda i, j: (j, 0)),
            _const_spec((1, D), lambda i, j: (0, 0)),
            _const_spec((1, D), lambda i, j: (0, 0)),
            _const_spec((1, D), lambda i, j: (0, 0)),
        ],
        out_specs=pl.BlockSpec((tm, D), lambda i, j: (i, 0)),
        scratch_shapes=[pltpu.VMEM((tm, D), jnp.float32)],
        compiler_params=pltpu.CompilerParams(
            dimension_semantics=("parallel", "arbitrary"),
            vmem_limit_bytes=_VMEM_LIMIT,
        ),
    )(xp, w1, b1.reshape(1, d_ff), w2, b2.reshape(1, D),
      gamma.reshape(1, D), beta.reshape(1, D))
    return out[:M] if Mp != M else out


# ---------------------------------------------------------------------------
# EncoderLayer forward
# ---------------------------------------------------------------------------
def prepare_params(params):
    """One-time fusion of the QKV weights (done outside the jitted forward)."""
    p = dict(params)
    a = dict(p["attn"])
    a["wqkv"] = jnp.concatenate([a["wq"], a["wk"], a["wv"]], axis=1)   # (D, 3D)
    a["bqkv"] = jnp.concatenate([a["bq"], a["bk"], a["bv"]], axis=0)   # (3D,)
    p["attn"] = a
    return p


@functools.partial(jax.jit, static_argnums=(2, 3))
def encoder_layer_forward(x, params, n_heads, output_attention=True):
    B, L, D = x.shape
    x2d = x.reshape(B * L, D)
    p = params["attn"]

    # Fused QKV projection (single matmul over the pre-concatenated weight).
    qkv = qkv_projection(x2d, p["wqkv"], p["bqkv"]).reshape(B, L, 3 * D)

    # new_x, attn = self.attention(x, x, x, attn_mask=None)
    ctx, attn = attention(qkv, n_heads, x.dtype, output_attention)

    # x = norm1(x + dropout(new_x))   (dropout = identity in eval mode)
    x1_2d = proj_add_layernorm(ctx.reshape(B * L, D), p["wo"], p["bo"],
                               x2d, params["ln1_g"], params["ln1_b"])

    # y = dropout(conv2(dropout(relu(conv1(x^T))))^T);  out = norm2(x + y)
    out2d = ffn_add_layernorm(x1_2d, params["w1"], params["b1"],
                              params["w2"], params["b2"],
                              params["ln2_g"], params["ln2_b"])
    return out2d.reshape(B, L, D), attn


# ---------------------------------------------------------------------------
# Pure-JAX reference for verification
# ---------------------------------------------------------------------------
def reference_forward(x, params, n_heads):
    B, L, D = x.shape
    dh = D // n_heads
    p = params["attn"]
    q = (x.reshape(B * L, D) @ p["wq"] + p["bq"]).reshape(B, L, n_heads, dh)
    k = (x.reshape(B * L, D) @ p["wk"] + p["bk"]).reshape(B, L, n_heads, dh)
    v = (x.reshape(B * L, D) @ p["wv"] + p["bv"]).reshape(B, L, n_heads, dh)
    s = jnp.einsum("blhe,bshe->bhls", q, k) / jnp.sqrt(jnp.float32(dh))
    a = jax.nn.softmax(s, axis=-1)
    ctx = jnp.einsum("bhls,bshd->blhd", a, v).reshape(B * L, D)
    new_x = (ctx @ p["wo"] + p["bo"]).reshape(B, L, D)

    def ln(z, g, b):
        mu = jnp.mean(z, -1, keepdims=True)
        var = jnp.mean((z - mu) ** 2, -1, keepdims=True)
        return (z - mu) * jax.lax.rsqrt(var + 1e-5) * g + b

    x1 = ln(x + new_x, params["ln1_g"], params["ln1_b"])
    h = jnp.maximum(x1 @ params["w1"] + params["b1"], 0.0)
    y = h @ params["w2"] + params["b2"]
    return ln(x1 + y, params["ln2_g"], params["ln2_b"]), a


# ---------------------------------------------------------------------------
# Main
# ---------------------------------------------------------------------------
if __name__ == "__main__":
    B, L, D = 2, 8, 32
    n_heads = 4
    d_ff = 4 * D  # default d_ff = 4 * d_model

    key = jax.random.PRNGKey(0)
    ks = jax.random.split(key, 12)
    scale = 0.1

    params = {
        "attn": {
            "wq": scale * jax.random.normal(ks[0], (D, D), jnp.float32),
            "bq": scale * jax.random.normal(ks[1], (D,), jnp.float32),
            "wk": scale * jax.random.normal(ks[2], (D, D), jnp.float32),
            "bk": scale * jax.random.normal(ks[3], (D,), jnp.float32),
            "wv": scale * jax.random.normal(ks[4], (D, D), jnp.float32),
            "bv": scale * jax.random.normal(ks[5], (D,), jnp.float32),
            "wo": scale * jax.random.normal(ks[6], (D, D), jnp.float32),
            "bo": scale * jax.random.normal(ks[7], (D,), jnp.float32),
        },
        # conv1: nn.Conv1d(D, d_ff, 1).weight is (d_ff, D, 1) -> stored as (D, d_ff)
        "w1": scale * jax.random.normal(ks[8], (D, d_ff), jnp.float32),
        "b1": scale * jax.random.normal(ks[9], (d_ff,), jnp.float32),
        # conv2: nn.Conv1d(d_ff, D, 1).weight is (D, d_ff, 1) -> stored as (d_ff, D)
        "w2": scale * jax.random.normal(ks[10], (d_ff, D), jnp.float32),
        "b2": scale * jax.random.normal(ks[11], (D,), jnp.float32),
        "ln1_g": jnp.ones((D,), jnp.float32),
        "ln1_b": jnp.zeros((D,), jnp.float32),
        "ln2_g": jnp.ones((D,), jnp.float32),
        "ln2_b": jnp.zeros((D,), jnp.float32),
    }
    kparams = prepare_params(params)

    x = jax.random.normal(jax.random.PRNGKey(42), (B, L, D), jnp.float32)

    out, attn = encoder_layer_forward(x, kparams, n_heads, True)
    out, attn = jax.block_until_ready(out), jax.block_until_ready(attn)

    ref_out, ref_attn = reference_forward(x, params, n_heads)
    assert out.shape == (B, L, D) and attn.shape == (B, n_heads, L, L)
    assert jnp.allclose(out, ref_out, atol=2e-3, rtol=2e-3)
    assert jnp.allclose(attn, ref_attn, atol=2e-3, rtol=2e-3)

    print("KERNEL_OK")
</pallas_src>

<mosaic_0001>
module attributes {stable_mosaic.version = 11 : i64} {
  func.func @_proj_add_ln_kernel(%arg0: i32, %arg1: memref<16x32xf32, #tpu.memory_space<vmem>>, %arg2: memref<32x32xf32, #tpu.memory_space<vmem>>, %arg3: memref<1x32xf32, #tpu.memory_space<vmem>>, %arg4: memref<16x32xf32, #tpu.memory_space<vmem>>, %arg5: memref<1x32xf32, #tpu.memory_space<vmem>>, %arg6: memref<1x32xf32, #tpu.memory_space<vmem>>, %arg7: memref<16x32xf32, #tpu.memory_space<vmem>>) attributes {dimension_semantics = [#tpu.dimension_semantics<parallel>], iteration_bounds = array<i64: 1>, scalar_prefetch = 0 : i64, scratch_operands = 0 : i64, tpu.core_type = #tpu.core_type<tc>, window_params = [{transform_indices = @transform_0, window_bounds = array<i64: 16, 32>}, {pipeline_mode = #tpu.pipeline_mode<synchronous>, transform_indices = @transform_1, window_bounds = array<i64: 32, 32>}, {pipeline_mode = #tpu.pipeline_mode<synchronous>, transform_indices = @transform_2, window_bounds = array<i64: 1, 32>}, {transform_indices = @transform_3, window_bounds = array<i64: 16, 32>}, {pipeline_mode = #tpu.pipeline_mode<synchronous>, transform_indices = @transform_4, window_bounds = array<i64: 1, 32>}, {pipeline_mode = #tpu.pipeline_mode<synchronous>, transform_indices = @transform_5, window_bounds = array<i64: 1, 32>}, {transform_indices = @transform_6, window_bounds = array<i64: 16, 32>}]} {
    %c0 = arith.constant 0 : index
    %c0_0 = arith.constant 0 : index
    %0 = vector.load %arg1[%c0, %c0_0] : memref<16x32xf32, #tpu.memory_space<vmem>>, vector<16x32xf32>
    %c0_1 = arith.constant 0 : index
    %c0_2 = arith.constant 0 : index
    %1 = vector.load %arg2[%c0_1, %c0_2] : memref<32x32xf32, #tpu.memory_space<vmem>>, vector<32x32xf32>
    %cst = arith.constant dense<0.000000e+00> : vector<16x32xf32>
    %2 = tpu.matmul %0, %1, %cst {dimension_numbers = #tpu.dot_dimension_numbers<[1], [0], [0], [1], [0, 0, 1, 1], [], []>} : vector<16x32xf32>, vector<32x32xf32>, vector<16x32xf32> -> vector<16x32xf32>
    %c0_3 = arith.constant 0 : index
    %c0_4 = arith.constant 0 : index
    %3 = vector.load %arg4[%c0_3, %c0_4] : memref<16x32xf32, #tpu.memory_space<vmem>>, vector<16x32xf32>
    %4 = arith.addf %3, %2 : vector<16x32xf32>
    %c0_5 = arith.constant 0 : index
    %c0_6 = arith.constant 0 : index
    %5 = vector.load %arg3[%c0_5, %c0_6] : memref<1x32xf32, #tpu.memory_space<vmem>>, vector<1x32xf32>
    %6 = vector.broadcast %5 : vector<1x32xf32> to vector<16x32xf32>
    %7 = arith.addf %4, %6 : vector<16x32xf32>
    %c0_7 = arith.constant 0 : index
    %c0_8 = arith.constant 0 : index
    %8 = vector.load %arg5[%c0_7, %c0_8] : memref<1x32xf32, #tpu.memory_space<vmem>>, vector<1x32xf32>
    %c0_9 = arith.constant 0 : index
    %c0_10 = arith.constant 0 : index
    %9 = vector.load %arg6[%c0_9, %c0_10] : memref<1x32xf32, #tpu.memory_space<vmem>>, vector<1x32xf32>
    %cst_11 = arith.constant dense<0.000000e+00> : vector<16xf32>
    %10 = vector.multi_reduction <add>, %7, %cst_11 [1] : vector<16x32xf32> to vector<16xf32>
    %11 = vector.shape_cast %10 : vector<16xf32> to vector<16x1xf32>
    %cst_12 = arith.constant 3.200000e+01 : f32
    %12 = vector.broadcast %cst_12 : f32 to vector<16x1xf32>
    %13 = arith.divf %11, %12 : vector<16x1xf32>
    %14 = arith.mulf %7, %7 : vector<16x32xf32>
    %cst_13 = arith.constant dense<0.000000e+00> : vector<16xf32>
    %15 = vector.multi_reduction <add>, %14, %cst_13 [1] : vector<16x32xf32> to vector<16xf32>
    %16 = vector.shape_cast %15 : vector<16xf32> to vector<16x1xf32>
    %cst_14 = arith.constant 3.200000e+01 : f32
    %17 = vector.broadcast %cst_14 : f32 to vector<16x1xf32>
    %18 = arith.divf %16, %17 : vector<16x1xf32>
    %19 = arith.mulf %13, %13 : vector<16x1xf32>
    %20 = arith.subf %18, %19 : vector<16x1xf32>
    %21 = vector.broadcast %13 : vector<16x1xf32> to vector<16x32xf32>
    %22 = arith.subf %7, %21 : vector<16x32xf32>
    %cst_15 = arith.constant 9.99999974E-6 : f32
    %23 = vector.broadcast %cst_15 : f32 to vector<16x1xf32>
    %24 = arith.addf %20, %23 : vector<16x1xf32>
    %25 = math.rsqrt %24 : vector<16x1xf32>
    %26 = vector.broadcast %25 : vector<16x1xf32> to vector<16x32xf32>
    %27 = arith.mulf %22, %26 : vector<16x32xf32>
    %28 = vector.broadcast %8 : vector<1x32xf32> to vector<16x32xf32>
    %29 = arith.mulf %27, %28 : vector<16x32xf32>
    %30 = vector.broadcast %9 : vector<1x32xf32> to vector<16x32xf32>
    %31 = arith.addf %29, %30 : vector<16x32xf32>
    %c0_16 = arith.constant 0 : index
    %c0_17 = arith.constant 0 : index
    %32 = vector.load %arg7[%c0_16, %c0_17] : memref<16x32xf32, #tpu.memory_space<vmem>>, vector<16x32xf32>
    tpu.vector_store %arg7[%c0_16, %c0_17], %31 {strides = array<i32>} : memref<16x32xf32, #tpu.memory_space<vmem>>, vector<16x32xf32>,
    return
  }
  func.func @transform_0(%arg0: i32) -> (i32, i32) {
    %c0_i32 = arith.constant 0 : i32
    %c0_i32_0 = arith.constant 0 : i32
    return %arg0, %c0_i32 : i32, i32
  }
  func.func @transform_1(%arg0: i32) -> (i32, i32) {
    %c0_i32 = arith.constant 0 : i32
    %c0_i32_0 = arith.constant 0 : i32
    %c0_i32_1 = arith.constant 0 : i32
    return %c0_i32, %c0_i32_0 : i32, i32
  }
  func.func @transform_2(%arg0: i32) -> (i32, i32) {
    %c0_i32 = arith.constant 0 : i32
    %c0_i32_0 = arith.constant 0 : i32
    %c0_i32_1 = arith.constant 0 : i32
    return %c0_i32, %c0_i32_0 : i32, i32
  }
  func.func @transform_3(%arg0: i32) -> (i32, i32) {
    %c0_i32 = arith.constant 0 : i32
    %c0_i32_0 = arith.constant 0 : i32
    return %arg0, %c0_i32 : i32, i32
  }
  func.func @transform_4(%arg0: i32) -> (i32, i32) {
    %c0_i32 = arith.constant 0 : i32
    %c0_i32_0 = arith.constant 0 : i32
    %c0_i32_1 = arith.constant 0 : i32
    return %c0_i32, %c0_i32_0 : i32, i32
  }
  func.func @transform_5(%arg0: i32) -> (i32, i32) {
    %c0_i32 = arith.constant 0 : i32
    %c0_i32_0 = arith.constant 0 : i32
    %c0_i32_1 = arith.constant 0 : i32
    return %c0_i32, %c0_i32_0 : i32, i32
  }
  func.func @transform_6(%arg0: i32) -> (i32, i32) {
    %c0_i32 = arith.constant 0 : i32
    %c0_i32_0 = arith.constant 0 : i32
    return %arg0, %c0_i32 : i32, i32
  }
}

module attributes {stable_mosaic.version = 11 : i64} {
  func.func @_attn_kernel(%arg0: i32, %arg1: i32, %arg2: memref<1x8x96xf32, #tpu.memory_space<vmem>>, %arg3: memref<1x8x96xf32, #tpu.memory_space<vmem>>, %arg4: memref<1x8x32xf32, #tpu.memory_space<vmem>>, %arg5: memref<1x4x8x8xf32, #tpu.memory_space<vmem>>) attributes {dimension_semantics = [#tpu.dimension_semantics<parallel>, #tpu.dimension_semantics<parallel>], iteration_bounds = array<i64: 2, 1>, scalar_prefetch = 0 : i64, scratch_operands = 0 : i64, tpu.core_type = #tpu.core_type<tc>, window_params = [{transform_indices = @transform_0, window_bounds = array<i64: 1, 8, 96>}, {transform_indices = @transform_1, window_bounds = array<i64: 1, 8, 96>}, {transform_indices = @transform_2, window_bounds = array<i64: 1, 8, 32>}, {transform_indices = @transform_3, window_bounds = array<i64: 1, 4, 8, 8>}]} {
    %c0 = arith.constant 0 : index
    %c0_0 = arith.constant 0 : index
    %c0_1 = arith.constant 0 : index
    %0 = vector.load %arg2[%c0, %c0_0, %c0_1] : memref<1x8x96xf32, #tpu.memory_space<vmem>>, vector<1x8x8xf32>
    %1 = vector.shape_cast %0 : vector<1x8x8xf32> to vector<8x8xf32>
    %cst = arith.constant 0.353553385 : f32
    %2 = vector.broadcast %cst : f32 to vector<8x8xf32>
    %3 = arith.mulf %1, %2 : vector<8x8xf32>
    %c0_2 = arith.constant 0 : index
    %c0_3 = arith.constant 0 : index
    %c32 = arith.constant 32 : index
    %4 = vector.load %arg3[%c0_2, %c0_3, %c32] : memref<1x8x96xf32, #tpu.memory_space<vmem>>, vector<1x8x8xf32>
    %5 = vector.shape_cast %4 : vector<1x8x8xf32> to vector<8x8xf32>
    %c0_4 = arith.constant 0 : index
    %c0_5 = arith.constant 0 : index
    %c64 = arith.constant 64 : index
    %6 = vector.load %arg3[%c0_4, %c0_5, %c64] : memref<1x8x96xf32, #tpu.memory_space<vmem>>, vector<1x8x8xf32>
    %7 = vector.shape_cast %6 : vector<1x8x8xf32> to vector<8x8xf32>
    %cst_6 = arith.constant dense<0.000000e+00> : vector<8x8xf32>
    %8 = tpu.matmul %3, %5, %cst_6 {dimension_numbers = #tpu.dot_dimension_numbers<[1], [1], [0], [0], [0, 0, 1, 0], [], []>} : vector<8x8xf32>, vector<8x8xf32>, vector<8x8xf32> -> vector<8x8xf32>
    %cst_7 = arith.constant dense<0xFF800000> : vector<8xf32>
    %9 = vector.multi_reduction <maximumf>, %8, %cst_7 [1] : vector<8x8xf32> to vector<8xf32>
    %10 = vector.shape_cast %9 : vector<8xf32> to vector<8x1xf32>
    %11 = vector.broadcast %10 : vector<8x1xf32> to vector<8x8xf32>
    %12 = arith.subf %8, %11 : vector<8x8xf32>
    %13 = math.exp %12 : vector<8x8xf32>
    %cst_8 = arith.constant dense<0.000000e+00> : vector<8xf32>
    %14 = vector.multi_reduction <add>, %13, %cst_8 [1] : vector<8x8xf32> to vector<8xf32>
    %15 = vector.shape_cast %14 : vector<8xf32> to vector<8x1xf32>
    %16 = tpu.reciprocal %15 : vector<8x1xf32> -> vector<8x1xf32>
    %17 = vector.broadcast %16 : vector<8x1xf32> to vector<8x8xf32>
    %18 = arith.mulf %13, %17 : vector<8x8xf32>
    %c0_9 = arith.constant 0 : index
    %c0_10 = arith.constant 0 : index
    %c0_11 = arith.constant 0 : index
    %c0_12 = arith.constant 0 : index
    %19 = vector.load %arg5[%c0_9, %c0_10, %c0_11, %c0_12] : memref<1x4x8x8xf32, #tpu.memory_space<vmem>>, vector<1x1x8x8xf32>
    %20 = vector.shape_cast %19 : vector<1x1x8x8xf32> to vector<8x8xf32>
    %21 = vector.shape_cast %18 : vector<8x8xf32> to vector<1x1x8x8xf32>
    tpu.vector_store %arg5[%c0_9, %c0_10, %c0_11, %c0_12], %21 {strides = array<i32>} : memref<1x4x8x8xf32, #tpu.memory_space<vmem>>, vector<1x1x8x8xf32>,
    %cst_13 = arith.constant dense<0.000000e+00> : vector<8x8xf32>
    %22 = tpu.matmul %18, %7, %cst_13 {dimension_numbers = #tpu.dot_dimension_numbers<[1], [0], [0], [1], [0, 0, 1, 1], [], []>} : vector<8x8xf32>, vector<8x8xf32>, vector<8x8xf32> -> vector<8x8xf32>
    %c0_14 = arith.constant 0 : index
    %c0_15 = arith.constant 0 : index
    %c8 = arith.constant 8 : index
    %23 = vector.load %arg2[%c0_14, %c0_15, %c8] : memref<1x8x96xf32, #tpu.memory_space<vmem>>, vector<1x8x8xf32>
    %24 = vector.shape_cast %23 : vector<1x8x8xf32> to vector<8x8xf32>
    %cst_16 = arith.constant 0.353553385 : f32
    %25 = vector.broadcast %cst_16 : f32 to vector<8x8xf32>
    %26 = arith.mulf %24, %25 : vector<8x8xf32>
    %c0_17 = arith.constant 0 : index
    %c0_18 = arith.constant 0 : index
    %c40 = arith.constant 40 : index
    %27 = vector.load %arg3[%c0_17, %c0_18, %c40] : memref<1x8x96xf32, #tpu.memory_space<vmem>>, vector<1x8x8xf32>
    %28 = vector.shape_cast %27 : vector<1x8x8xf32> to vector<8x8xf32>
    %c0_19 = arith.constant 0 : index
    %c0_20 = arith.constant 0 : index
    %c72 = arith.constant 72 : index
    %29 = vector.load %arg3[%c0_19, %c0_20, %c72] : memref<1x8x96xf32, #tpu.memory_space<vmem>>, vector<1x8x8xf32>
    %30 = vector.shape_cast %29 : vector<1x8x8xf32> to vector<8x8xf32>
    %cst_21 = arith.constant dense<0.000000e+00> : vector<8x8xf32>
    %31 = tpu.matmul %26, %28, %cst_21 {dimension_numbers = #tpu.dot_dimension_numbers<[1], [1], [0], [0], [0, 0, 1, 0], [], []>} : vector<8x8xf32>, vector<8x8xf32>, vector<8x8xf32> -> vector<8x8xf32>
    %cst_22 = arith.constant dense<0xFF800000> : vector<8xf32>
    %32 = vector.multi_reduction <maximumf>, %31, %cst_22 [1] : vector<8x8xf32> to vector<8xf32>
    %33 = vector.shape_cast %32 : vector<8xf32> to vector<8x1xf32>
    %34 = vector.broadcast %33 : vector<8x1xf32> to vector<8x8xf32>
    %35 = arith.subf %31, %34 : vector<8x8xf32>
    %36 = math.exp %35 : vector<8x8xf32>
    %cst_23 = arith.constant dense<0.000000e+00> : vector<8xf32>
    %37 = vector.multi_reduction <add>, %36, %cst_23 [1] : vector<8x8xf32> to vector<8xf32>
    %38 = vector.shape_cast %37 : vector<8xf32> to vector<8x1xf32>
    %39 = tpu.reciprocal %38 : vector<8x1xf32> -> vector<8x1xf32>
    %40 = vector.broadcast %39 : vector<8x1xf32> to vector<8x8xf32>
    %41 = arith.mulf %36, %40 : vector<8x8xf32>
    %c0_24 = arith.constant 0 : index
    %c1 = arith.constant 1 : index
    %c0_25 = arith.constant 0 : index
    %c0_26 = arith.constant 0 : index
    %42 = vector.load %arg5[%c0_24, %c1, %c0_25, %c0_26] : memref<1x4x8x8xf32, #tpu.memory_space<vmem>>, vector<1x1x8x8xf32>
    %43 = vector.shape_cast %42 : vector<1x1x8x8xf32> to vector<8x8xf32>
    %44 = vector.shape_cast %41 : vector<8x8xf32> to vector<1x1x8x8xf32>
    tpu.vector_store %arg5[%c0_24, %c1, %c0_25, %c0_26], %44 {strides = array<i32>} : memref<1x4x8x8xf32, #tpu.memory_space<vmem>>, vector<1x1x8x8xf32>,
    %cst_27 = arith.constant dense<0.000000e+00> : vector<8x8xf32>
    %45 = tpu.matmul %41, %30, %cst_27 {dimension_numbers = #tpu.dot_dimension_numbers<[1], [0], [0], [1], [0, 0, 1, 1], [], []>} : vector<8x8xf32>, vector<8x8xf32>, vector<8x8xf32> -> vector<8x8xf32>
    %c0_28 = arith.constant 0 : index
    %c0_29 = arith.constant 0 : index
    %c16 = arith.constant 16 : index
    %46 = vector.load %arg2[%c0_28, %c0_29, %c16] : memref<1x8x96xf32, #tpu.memory_space<vmem>>, vector<1x8x8xf32>
    %47 = vector.shape_cast %46 : vector<1x8x8xf32> to vector<8x8xf32>
    %cst_30 = arith.constant 0.353553385 : f32
    %48 = vector.broadcast %cst_30 : f32 to vector<8x8xf32>
    %49 = arith.mulf %47, %48 : vector<8x8xf32>
    %c0_31 = arith.constant 0 : index
    %c0_32 = arith.constant 0 : index
    %c48 = arith.constant 48 : index
    %50 = vector.load %arg3[%c0_31, %c0_32, %c48] : memref<1x8x96xf32, #tpu.memory_space<vmem>>, vector<1x8x8xf32>
    %51 = vector.shape_cast %50 : vector<1x8x8xf32> to vector<8x8xf32>
    %c0_33 = arith.constant 0 : index
    %c0_34 = arith.constant 0 : index
    %c80 = arith.constant 80 : index
    %52 = vector.load %arg3[%c0_33, %c0_34, %c80] : memref<1x8x96xf32, #tpu.memory_space<vmem>>, vector<1x8x8xf32>
    %53 = vector.shape_cast %52 : vector<1x8x8xf32> to vector<8x8xf32>
    %cst_35 = arith.constant dense<0.000000e+00> : vector<8x8xf32>
    %54 = tpu.matmul %49, %51, %cst_35 {dimension_numbers = #tpu.dot_dimension_numbers<[1], [1], [0], [0], [0, 0, 1, 0], [], []>} : vector<8x8xf32>, vector<8x8xf32>, vector<8x8xf32> -> vector<8x8xf32>
    %cst_36 = arith.constant dense<0xFF800000> : vector<8xf32>
    %55 = vector.multi_reduction <maximumf>, %54, %cst_36 [1] : vector<8x8xf32> to vector<8xf32>
    %56 = vector.shape_cast %55 : vector<8xf32> to vector<8x1xf32>
    %57 = vector.broadcast %56 : vector<8x1xf32> to vector<8x8xf32>
    %58 = arith.subf %54, %57 : vector<8x8xf32>
    %59 = math.exp %58 : vector<8x8xf32>
    %cst_37 = arith.constant dense<0.000000e+00> : vector<8xf32>
    %60 = vector.multi_reduction <add>, %59, %cst_37 [1] : vector<8x8xf32> to vector<8xf32>
    %61 = vector.shape_cast %60 : vector<8xf32> to vector<8x1xf32>
    %62 = tpu.reciprocal %61 : vector<8x1xf32> -> vector<8x1xf32>
    %63 = vector.broadcast %62 : vector<8x1xf32> to vector<8x8xf32>
    %64 = arith.mulf %59, %63 : vector<8x8xf32>
    %c0_38 = arith.constant 0 : index
    %c2 = arith.constant 2 : index
    %c0_39 = arith.constant 0 : index
    %c0_40 = arith.constant 0 : index
    %65 = vector.load %arg5[%c0_38, %c2, %c0_39, %c0_40] : memref<1x4x8x8xf32, #tpu.memory_space<vmem>>, vector<1x1x8x8xf32>
    %66 = vector.shape_cast %65 : vector<1x1x8x8xf32> to vector<8x8xf32>
    %67 = vector.shape_cast %64 : vector<8x8xf32> to vector<1x1x8x8xf32>
    tpu.vector_store %arg5[%c0_38, %c2, %c0_39, %c0_40], %67 {strides = array<i32>} : memref<1x4x8x8xf32, #tpu.memory_space<vmem>>, vector<1x1x8x8xf32>,
    %cst_41 = arith.constant dense<0.000000e+00> : vector<8x8xf32>
    %68 = tpu.matmul %64, %53, %cst_41 {dimension_numbers = #tpu.dot_dimension_numbers<[1], [0], [0], [1], [0, 0, 1, 1], [], []>} : vector<8x8xf32>, vector<8x8xf32>, vector<8x8xf32> -> vector<8x8xf32>
    %c0_42 = arith.constant 0 : index
    %c0_43 = arith.constant 0 : index
    %c24 = arith.constant 24 : index
    %69 = vector.load %arg2[%c0_42, %c0_43, %c24] : memref<1x8x96xf32, #tpu.memory_space<vmem>>, vector<1x8x8xf32>
    %70 = vector.shape_cast %69 : vector<1x8x8xf32> to vector<8x8xf32>
    %cst_44 = arith.constant 0.353553385 : f32
    %71 = vector.broadcast %cst_44 : f32 to vector<8x8xf32>
    %72 = arith.mulf %70, %71 : vector<8x8xf32>
    %c0_45 = arith.constant 0 : index
    %c0_46 = arith.constant 0 : index
    %c56 = arith.constant 56 : index
    %73 = vector.load %arg3[%c0_45, %c0_46, %c56] : memref<1x8x96xf32, #tpu.memory_space<vmem>>, vector<1x8x8xf32>
    %74 = vector.shape_cast %73 : vector<1x8x8xf32> to vector<8x8xf32>
    %c0_47 = arith.constant 0 : index
    %c0_48 = arith.constant 0 : index
    %c88 = arith.constant 88 : index
    %75 = vector.load %arg3[%c0_47, %c0_48, %c88] : memref<1x8x96xf32, #tpu.memory_space<vmem>>, vector<1x8x8xf32>
    %76 = vector.shape_cast %75 : vector<1x8x8xf32> to vector<8x8xf32>
    %cst_49 = arith.constant dense<0.000000e+00> : vector<8x8xf32>
    %77 = tpu.matmul %72, %74, %cst_49 {dimension_numbers = #tpu.dot_dimension_numbers<[1], [1], [0], [0], [0, 0, 1, 0], [], []>} : vector<8x8xf32>, vector<8x8xf32>, vector<8x8xf32> -> vector<8x8xf32>
    %cst_50 = arith.constant dense<0xFF800000> : vector<8xf32>
    %78 = vector.multi_reduction <maximumf>, %77, %cst_50 [1] : vector<8x8xf32> to vector<8xf32>
    %79 = vector.shape_cast %78 : vector<8xf32> to vector<8x1xf32>
    %80 = vector.broadcast %79 : vector<8x1xf32> to vector<8x8xf32>
    %81 = arith.subf %77, %80 : vector<8x8xf32>
    %82 = math.exp %81 : vector<8x8xf32>
    %cst_51 = arith.constant dense<0.000000e+00> : vector<8xf32>
    %83 = vector.multi_reduction <add>, %82, %cst_51 [1] : vector<8x8xf32> to vector<8xf32>
    %84 = vector.shape_cast %83 : vector<8xf32> to vector<8x1xf32>
    %85 = tpu.reciprocal %84 : vector<8x1xf32> -> vector<8x1xf32>
    %86 = vector.broadcast %85 : vector<8x1xf32> to vector<8x8xf32>
    %87 = arith.mulf %82, %86 : vector<8x8xf32>
    %c0_52 = arith.constant 0 : index
    %c3 = arith.constant 3 : index
    %c0_53 = arith.constant 0 : index
    %c0_54 = arith.constant 0 : index
    %88 = vector.load %arg5[%c0_52, %c3, %c0_53, %c0_54] : memref<1x4x8x8xf32, #tpu.memory_space<vmem>>, vector<1x1x8x8xf32>
    %89 = vector.shape_cast %88 : vector<1x1x8x8xf32> to vector<8x8xf32>
    %90 = vector.shape_cast %87 : vector<8x8xf32> to vector<1x1x8x8xf32>
    tpu.vector_store %arg5[%c0_52, %c3, %c0_53, %c0_54], %90 {strides = array<i32>} : memref<1x4x8x8xf32, #tpu.memory_space<vmem>>, vector<1x1x8x8xf32>,
    %cst_55 = arith.constant dense<0.000000e+00> : vector<8x8xf32>
    %91 = tpu.matmul %87, %76, %cst_55 {dimension_numbers = #tpu.dot_dimension_numbers<[1], [0], [0], [1], [0, 0, 1, 1], [], []>} : vector<8x8xf32>, vector<8x8xf32>, vector<8x8xf32> -> vector<8x8xf32>
    %92 = tpu.concatenate %22, %45, %68, %91 in 1 : vector<8x8xf32>, vector<8x8xf32>, vector<8x8xf32>, vector<8x8xf32> -> vector<8x32xf32>
    %c0_56 = arith.constant 0 : index
    %c0_57 = arith.constant 0 : index
    %c0_58 = arith.constant 0 : index
    %93 = vector.load %arg4[%c0_56, %c0_57, %c0_58] : memref<1x8x32xf32, #tpu.memory_space<vmem>>, vector<1x8x32xf32>
    %94 = vector.shape_cast %93 : vector<1x8x32xf32> to vector<8x32xf32>
    %95 = vector.shape_cast %92 : vector<8x32xf32> to vector<1x8x32xf32>
    tpu.vector_store %arg4[%c0_56, %c0_57, %c0_58], %95 {strides = array<i32>} : memref<1x8x32xf32, #tpu.memory_space<vmem>>, vector<1x8x32xf32>,
    return
  }
  func.func @transform_0(%arg0: i32, %arg1: i32) -> (i32, i32, i32) {
    %c0_i32 = arith.constant 0 : i32
    %c0_i32_0 = arith.constant 0 : i32
    return %arg0, %arg1, %c0_i32 : i32, i32, i32
  }
  func.func @transform_1(%arg0: i32, %arg1: i32) -> (i32, i32, i32) {
    %c0_i32 = arith.constant 0 : i32
    %c0_i32_0 = arith.constant 0 : i32
    %c0_i32_1 = arith.constant 0 : i32
    return %arg0, %c0_i32, %c0_i32_0 : i32, i32, i32
  }
  func.func @transform_2(%arg0: i32, %arg1: i32) -> (i32, i32, i32) {
    %c0_i32 = arith.constant 0 : i32
    %c0_i32_0 = arith.constant 0 : i32
    return %arg0, %arg1, %c0_i32 : i32, i32, i32
  }
  func.func @transform_3(%arg0: i32, %arg1: i32) -> (i32, i32, i32, i32) {
    %c0_i32 = arith.constant 0 : i32
    %c0_i32_0 = arith.constant 0 : i32
    %c0_i32_1 = arith.constant 0 : i32
    return %arg0, %c0_i32, %arg1, %c0_i32_0 : i32, i32, i32, i32
  }
}

module attributes {stable_mosaic.version = 11 : i64} {
  func.func @_qkv_kernel(%arg0: i32, %arg1: memref<16x32xf32, #tpu.memory_space<vmem>>, %arg2: memref<32x96xf32, #tpu.memory_space<vmem>>, %arg3: memref<1x96xf32, #tpu.memory_space<vmem>>, %arg4: memref<16x96xf32, #tpu.memory_space<vmem>>) attributes {dimension_semantics = [#tpu.dimension_semantics<parallel>], iteration_bounds = array<i64: 1>, scalar_prefetch = 0 : i64, scratch_operands = 0 : i64, tpu.core_type = #tpu.core_type<tc>, window_params = [{transform_indices = @transform_0, window_bounds = array<i64: 16, 32>}, {pipeline_mode = #tpu.pipeline_mode<synchronous>, transform_indices = @transform_1, window_bounds = array<i64: 32, 96>}, {pipeline_mode = #tpu.pipeline_mode<synchronous>, transform_indices = @transform_2, window_bounds = array<i64: 1, 96>}, {transform_indices = @transform_3, window_bounds = array<i64: 16, 96>}]} {
    %c0 = arith.constant 0 : index
    %c0_0 = arith.constant 0 : index
    %0 = vector.load %arg1[%c0, %c0_0] : memref<16x32xf32, #tpu.memory_space<vmem>>, vector<16x32xf32>
    %c0_1 = arith.constant 0 : index
    %c0_2 = arith.constant 0 : index
    %1 = vector.load %arg2[%c0_1, %c0_2] : memref<32x96xf32, #tpu.memory_space<vmem>>, vector<32x96xf32>
    %cst = arith.constant dense<0.000000e+00> : vector<16x96xf32>
    %2 = tpu.matmul %0, %1, %cst {dimension_numbers = #tpu.dot_dimension_numbers<[1], [0], [0], [1], [0, 0, 1, 1], [], []>} : vector<16x32xf32>, vector<32x96xf32>, vector<16x96xf32> -> vector<16x96xf32>
    %c0_3 = arith.constant 0 : index
    %c0_4 = arith.constant 0 : index
    %3 = vector.load %arg3[%c0_3, %c0_4] : memref<1x96xf32, #tpu.memory_space<vmem>>, vector<1x96xf32>
    %4 = vector.broadcast %3 : vector<1x96xf32> to vector<16x96xf32>
    %5 = arith.addf %2, %4 : vector<16x96xf32>
    %c0_5 = arith.constant 0 : index
    %c0_6 = arith.constant 0 : index
    %6 = vector.load %arg4[%c0_5, %c0_6] : memref<16x96xf32, #tpu.memory_space<vmem>>, vector<16x96xf32>
    tpu.vector_store %arg4[%c0_5, %c0_6], %5 {strides = array<i32>} : memref<16x96xf32, #tpu.memory_space<vmem>>, vector<16x96xf32>,
    return
  }
  func.func @transform_0(%arg0: i32) -> (i32, i32) {
    %c0_i32 = arith.constant 0 : i32
    %c0_i32_0 = arith.constant 0 : i32
    return %arg0, %c0_i32 : i32, i32
  }
  func.func @transform_1(%arg0: i32) -> (i32, i32) {
    %c0_i32 = arith.constant 0 : i32
    %c0_i32_0 = arith.constant 0 : i32
    %c0_i32_1 = arith.constant 0 : i32
    return %c0_i32, %c0_i32_0 : i32, i32
  }
  func.func @transform_2(%arg0: i32) -> (i32, i32) {
    %c0_i32 = arith.constant 0 : i32
    %c0_i32_0 = arith.constant 0 : i32
    %c0_i32_1 = arith.constant 0 : i32
    return %c0_i32, %c0_i32_0 : i32, i32
  }
  func.func @transform_3(%arg0: i32) -> (i32, i32) {
    %c0_i32 = arith.constant 0 : i32
    %c0_i32_0 = arith.constant 0 : i32
    return %arg0, %c0_i32 : i32, i32
  }
}

module attributes {stable_mosaic.version = 11 : i64} {
  func.func @_ffn_add_ln_kernel(%arg0: i32, %arg1: i32, %arg2: memref<16x32xf32, #tpu.memory_space<vmem>>, %arg3: memref<32x128xf32, #tpu.memory_space<vmem>>, %arg4: memref<1x128xf32, #tpu.memory_space<vmem>>, %arg5: memref<128x32xf32, #tpu.memory_space<vmem>>, %arg6: memref<1x32xf32, #tpu.memory_space<vmem>>, %arg7: memref<1x32xf32, #tpu.memory_space<vmem>>, %arg8: memref<1x32xf32, #tpu.memory_space<vmem>>, %arg9: memref<16x32xf32, #tpu.memory_space<vmem>>, %arg10: memref<16x32xf32, #tpu.memory_space<vmem>>) attributes {dimension_semantics = [#tpu.dimension_semantics<parallel>, #tpu.dimension_semantics<arbitrary>], iteration_bounds = array<i64: 1, 1>, scalar_prefetch = 0 : i64, scratch_operands = 1 : i64, tpu.core_type = #tpu.core_type<tc>, window_params = [{transform_indices = @transform_0, window_bounds = array<i64: 16, 32>}, {transform_indices = @transform_1, window_bounds = array<i64: 32, 128>}, {transform_indices = @transform_2, window_bounds = array<i64: 1, 128>}, {transform_indices = @transform_3, window_bounds = array<i64: 128, 32>}, {pipeline_mode = #tpu.pipeline_mode<synchronous>, transform_indices = @transform_4, window_bounds = array<i64: 1, 32>}, {pipeline_mode = #tpu.pipeline_mode<synchronous>, transform_indices = @transform_5, window_bounds = array<i64: 1, 32>}, {pipeline_mode = #tpu.pipeline_mode<synchronous>, transform_indices = @transform_6, window_bounds = array<i64: 1, 32>}, {transform_indices = @transform_7, window_bounds = array<i64: 16, 32>}]} {
    %c0 = arith.constant 0 : index
    %c0_0 = arith.constant 0 : index
    %0 = vector.load %arg2[%c0, %c0_0] : memref<16x32xf32, #tpu.memory_space<vmem>>, vector<16x32xf32>
    %c0_i32 = arith.constant 0 : i32
    %1 = arith.cmpi eq, %arg1, %c0_i32 : i32
    %2 = arith.extui %1 : i1 to i32
    %c0_i32_1 = arith.constant 0 : i32
    %3 = arith.cmpi ne, %2, %c0_i32_1 : i32
    scf.if %3 {
      %c0_16 = arith.constant 0 : index
      %c0_17 = arith.constant 0 : index
      %19 = vector.load %arg6[%c0_16, %c0_17] : memref<1x32xf32, #tpu.memory_space<vmem>>, vector<1x32xf32>
      %20 = vector.broadcast %19 : vector<1x32xf32> to vector<16x32xf32>
      %21 = arith.addf %0, %20 : vector<16x32xf32>
      %c0_18 = arith.constant 0 : index
      %c0_19 = arith.constant 0 : index
      %22 = vector.load %arg10[%c0_18, %c0_19] : memref<16x32xf32, #tpu.memory_space<vmem>>, vector<16x32xf32>
      tpu.vector_store %arg10[%c0_18, %c0_19], %21 {strides = array<i32>} : memref<16x32xf32, #tpu.memory_space<vmem>>, vector<16x32xf32>,
    } else {
    }
    %c0_2 = arith.constant 0 : index
    %c0_3 = arith.constant 0 : index
    %4 = vector.load %arg3[%c0_2, %c0_3] : memref<32x128xf32, #tpu.memory_space<vmem>>, vector<32x128xf32>
    %cst = arith.constant dense<0.000000e+00> : vector<16x128xf32>
    %5 = tpu.matmul %0, %4, %cst {dimension_numbers = #tpu.dot_dimension_numbers<[1], [0], [0], [1], [0, 0, 1, 1], [], []>} : vector<16x32xf32>, vector<32x128xf32>, vector<16x128xf32> -> vector<16x128xf32>
    %c0_4 = arith.constant 0 : index
    %c0_5 = arith.constant 0 : index
    %6 = vector.load %arg4[%c0_4, %c0_5] : memref<1x128xf32, #tpu.memory_space<vmem>>, vector<1x128xf32>
    %7 = vector.broadcast %6 : vector<1x128xf32> to vector<16x128xf32>
    %8 = arith.addf %5, %7 : vector<16x128xf32>
    %cst_6 = arith.constant 0.000000e+00 : f32
    %9 = vector.broadcast %cst_6 : f32 to vector<16x128xf32>
    %10 = arith.maximumf %8, %9 : vector<16x128xf32>
    %c0_7 = arith.constant 0 : index
    %c0_8 = arith.constant 0 : index
    %11 = vector.load %arg10[%c0_7, %c0_8] : memref<16x32xf32, #tpu.memory_space<vmem>>, vector<16x32xf32>
    %c0_9 = arith.constant 0 : index
    %c0_10 = arith.constant 0 : index
    %12 = vector.load %arg5[%c0_9, %c0_10] : memref<128x32xf32, #tpu.memory_space<vmem>>, vector<128x32xf32>
    %cst_11 = arith.constant dense<0.000000e+00> : vector<16x32xf32>
    %13 = tpu.matmul %10, %12, %cst_11 {dimension_numbers = #tpu.dot_dimension_numbers<[1], [0], [0], [1], [0, 0, 1, 1], [], []>} : vector<16x128xf32>, vector<128x32xf32>, vector<16x32xf32> -> vector<16x32xf32>
    %14 = arith.addf %11, %13 : vector<16x32xf32>
    %c0_12 = arith.constant 0 : index
    %c0_13 = arith.constant 0 : index
    %15 = vector.load %arg10[%c0_12, %c0_13] : memref<16x32xf32, #tpu.memory_space<vmem>>, vector<16x32xf32>
    tpu.vector_store %arg10[%c0_12, %c0_13], %14 {strides = array<i32>} : memref<16x32xf32, #tpu.memory_space<vmem>>, vector<16x32xf32>,
    %c0_i32_14 = arith.constant 0 : i32
    %16 = arith.cmpi eq, %arg1, %c0_i32_14 : i32
    %17 = arith.extui %16 : i1 to i32
    %c0_i32_15 = arith.constant 0 : i32
    %18 = arith.cmpi ne, %17, %c0_i32_15 : i32
    scf.if %18 {
      %c0_16 = arith.constant 0 : index
      %c0_17 = arith.constant 0 : index
      %19 = vector.load %arg10[%c0_16, %c0_17] : memref<16x32xf32, #tpu.memory_space<vmem>>, vector<16x32xf32>
      %c0_18 = arith.constant 0 : index
      %c0_19 = arith.constant 0 : index
      %20 = vector.load %arg7[%c0_18, %c0_19] : memref<1x32xf32, #tpu.memory_space<vmem>>, vector<1x32xf32>
      %c0_20 = arith.constant 0 : index
      %c0_21 = arith.constant 0 : index
      %21 = vector.load %arg8[%c0_20, %c0_21] : memref<1x32xf32, #tpu.memory_space<vmem>>, vector<1x32xf32>
      %cst_22 = arith.constant dense<0.000000e+00> : vector<16xf32>
      %22 = vector.multi_reduction <add>, %19, %cst_22 [1] : vector<16x32xf32> to vector<16xf32>
      %23 = vector.shape_cast %22 : vector<16xf32> to vector<16x1xf32>
      %cst_23 = arith.constant 3.200000e+01 : f32
      %24 = vector.broadcast %cst_23 : f32 to vector<16x1xf32>
      %25 = arith.divf %23, %24 : vector<16x1xf32>
      %26 = arith.mulf %19, %19 : vector<16x32xf32>
      %cst_24 = arith.constant dense<0.000000e+00> : vector<16xf32>
      %27 = vector.multi_reduction <add>, %26, %cst_24 [1] : vector<16x32xf32> to vector<16xf32>
      %28 = vector.shape_cast %27 : vector<16xf32> to vector<16x1xf32>
      %cst_25 = arith.constant 3.200000e+01 : f32
      %29 = vector.broadcast %cst_25 : f32 to vector<16x1xf32>
      %30 = arith.divf %28, %29 : vector<16x1xf32>
      %31 = arith.mulf %25, %25 : vector<16x1xf32>
      %32 = arith.subf %30, %31 : vector<16x1xf32>
      %33 = vector.broadcast %25 : vector<16x1xf32> to vector<16x32xf32>
      %34 = arith.subf %19, %33 : vector<16x32xf32>
      %cst_26 = arith.constant 9.99999974E-6 : f32
      %35 = vector.broadcast %cst_26 : f32 to vector<16x1xf32>
      %36 = arith.addf %32, %35 : vector<16x1xf32>
      %37 = math.rsqrt %36 : vector<16x1xf32>
      %38 = vector.broadcast %37 : vector<16x1xf32> to vector<16x32xf32>
      %39 = arith.mulf %34, %38 : vector<16x32xf32>
      %40 = vector.broadcast %20 : vector<1x32xf32> to vector<16x32xf32>
      %41 = arith.mulf %39, %40 : vector<16x32xf32>
      %42 = vector.broadcast %21 : vector<1x32xf32> to vector<16x32xf32>
      %43 = arith.addf %41, %42 : vector<16x32xf32>
      %c0_27 = arith.constant 0 : index
      %c0_28 = arith.constant 0 : index
      %44 = vector.load %arg9[%c0_27, %c0_28] : memref<16x32xf32, #tpu.memory_space<vmem>>, vector<16x32xf32>
      tpu.vector_store %arg9[%c0_27, %c0_28], %43 {strides = array<i32>} : memref<16x32xf32, #tpu.memory_space<vmem>>, vector<16x32xf32>,
    } else {
    }
    return
  }
  func.func @transform_0(%arg0: i32, %arg1: i32) -> (i32, i32) {
    %c0_i32 = arith.constant 0 : i32
    %c0_i32_0 = arith.constant 0 : i32
    return %arg0, %c0_i32 : i32, i32
  }
  func.func @transform_1(%arg0: i32, %arg1: i32) -> (i32, i32) {
    %c0_i32 = arith.constant 0 : i32
    %c0_i32_0 = arith.constant 0 : i32
    return %c0_i32, %arg1 : i32, i32
  }
  func.func @transform_2(%arg0: i32, %arg1: i32) -> (i32, i32) {
    %c0_i32 = arith.constant 0 : i32
    %c0_i32_0 = arith.constant 0 : i32
    return %c0_i32, %arg1 : i32, i32
  }
  func.func @transform_3(%arg0: i32, %arg1: i32) -> (i32, i32) {
    %c0_i32 = arith.constant 0 : i32
    %c0_i32_0 = arith.constant 0 : i32
    return %arg1, %c0_i32 : i32, i32
  }
  func.func @transform_4(%arg0: i32, %arg1: i32) -> (i32, i32) {
    %c0_i32 = arith.constant 0 : i32
    %c0_i32_0 = arith.constant 0 : i32
    %c0_i32_1 = arith.constant 0 : i32
    return %c0_i32, %c0_i32_0 : i32, i32
  }
  func.func @transform_5(%arg0: i32, %arg1: i32) -> (i32, i32) {
    %c0_i32 = arith.constant 0 : i32
    %c0_i32_0 = arith.constant 0 : i32
    %c0_i32_1 = arith.constant 0 : i32
    return %c0_i32, %c0_i32_0 : i32, i32
  }
  func.func @transform_6(%arg0: i32, %arg1: i32) -> (i32, i32) {
    %c0_i32 = arith.constant 0 : i32
    %c0_i32_0 = arith.constant 0 : i32
    %c0_i32_1 = arith.constant 0 : i32
    return %c0_i32, %c0_i32_0 : i32, i32
  }
  func.func @transform_7(%arg0: i32, %arg1: i32) -> (i32, i32) {
    %c0_i32 = arith.constant 0 : i32
    %c0_i32_0 = arith.constant 0 : i32
    return %arg0, %c0_i32 : i32, i32
  }
}

</mosaic_0001>

<bundles_post_ra>
// kernel: encoder_layer_forward.6
= control target key start
LH: loop header
LB: loop body
LE: loop exit
PB: predicated region body
PF: predicated region fallthrough
CT: control target
= control target key end

     0   :  { %vm29_vm0 = vcmask 261120   ;;  %s295_s1 = inlined_call_operand.vmem [shape: f32[32,32], index: 1, kind: input, shape index: {}]   ;;  %s296_s0 = inlined_call_operand.vmem [shape: f32[16,32], index: 0, kind: input, shape index: {}]   ;;  %s297_s3 = inlined_call_operand.vmem [shape: f32[16,32], index: 3, kind: input, shape index: {}]   ;;  %s298_s2 = inlined_call_operand.vmem [shape: f32[1,32], index: 2, kind: input, shape index: {}]   ;;  %s299_s4 = inlined_call_operand.vmem [shape: f32[1,32], index: 4, kind: input, shape index: {}]   ;;  %s300_s5 = inlined_call_operand.vmem [shape: f32[1,32], index: 5, kind: input, shape index: {}]   ;;  %s301_s6 = inlined_call_operand.vmem [shape: f32[16,32], index: 6, kind: output, shape index: {}]  }
   0x1   :  { %v25_v0 = vld [vmem:[%s295_s1] sm:$0xff]  ;;  %v26_v1 = vld [vmem:[%s295_s1 + $0x8] sm:$0xff]  ;;  %v27_v2 = vld [vmem:[%s295_s1 + $0x10] sm:$0xff] }
   0x2   :  { %v201_v3 = vpack.c.bf16 %v26_v1, %v25_v0  ;;  %v28_v4 = vld [vmem:[%s295_s1 + $0x18] sm:$0xff]  ;;  %v23_v5 = vld [vmem:[%s296_s0] sm:$0xff]  ;;  %v24_v7 = vld [vmem:[%s296_s0 + $0x8] sm:$0xff] }
   0x3   :  { %v205_v6 = vpack.c.bf16 %v28_v4, %v27_v2  ;;  %198 = vmatprep.mubr.msk.f32.mxu0 %vm29_vm0, %v23_v5  ;;  %v112_v8 = vld [vmem:[%s297_s3 + $0x8] sm:$0xff]  ;;  %v111_v9 = vld [vmem:[%s297_s3] sm:$0xff] }
   0x4   :  { %202 = vmatprep.subr.bf16.mxu0 %v201_v3  ;;  %v181_v12 = vld [vmem:[%s298_s2] ss:$0 sm:$0xff] }
   0x5   :  { %204 = vmatpush3.bf16.msra.mxu0 %v201_v3  ;;  %v182_v39 = vld [vmem:[%s299_s4] ss:$0 sm:$0xff] }
   0x6   :  { %206 = vmatprep.subr.bf16.mxu0 %v205_v6  ;;  %v183_v41 = vld [vmem:[%s300_s5] ss:$0 sm:$0xff] }
   0x9   :  { %208 = vmatpush3.bf16.msra.mxu0 %v205_v6 }
   0xc   :  { %199 = vmatmul.mubr.msk.f32.vlgmr.msra.gmra.mrb[0].mxu0 %vm29_vm0, %v24_v7 }
  0xdf   :  { %v200_v10 = vpop.f32.mrb[0].mxu0 }
  0xe0   :  { %v114_v11 = vadd.f32 %v200_v10, %v112_v8  ;;  %v102_v13 = vpop.f32.mrb[1].mxu0 }
  0xe1   :  { %v113_v14 = vadd.f32 %v111_v9, %v102_v13 }
  0xe2   :  { %v123_v15 = vadd.f32 %v181_v12, %v114_v11 }
  0xe3   :  { %v122_v16 = vadd.f32 %v181_v12, %v113_v14 }
  0xe4   :  { %v136_v20 = vmul.f32 %v123_v15, %v123_v15  ;;  %v129_v21 = vsel %vm29_vm0, %v123_v15, 0.0 }
  0xe5   :  { %v126_v17 = vsel %vm29_vm0, %v122_v16, 0.0  ;;  %v135_v18 = vmul.f32 %v122_v16, %v122_v16 }
  0xe6   :  { %127 = vadd.xlane.f32.xlu0 %v126_v17  ;;  %v140_v22 = vsel %vm29_vm0, %v136_v20, 0.0 }
  0xe7   :  { %v137_v19 = vsel %vm29_vm0, %v135_v18, 0.0 }
  0xe8   :  { %138 = vadd.xlane.f32.xlu1 %v137_v19 }
  0xea   :  { %130 = vadd.xlane.f32.xlu0 %v129_v21 }
  0xec   :  { %141 = vadd.xlane.f32.xlu1 %v140_v22 }
 0x173   :  { %v128_v23 = vpop.xlane.xlu0 %127 }
 0x174   :  { %v133_v24 = vmul.f32 0.03125, %v128_v23 }
 0x175   :  { %v139_v25 = vpop.xlane.xlu1 %138 }
 0x176   :  { %v145_v26 = vmul.f32 %v133_v24, %v133_v24  ;;  %v143_v27 = vmul.f32 0.03125, %v139_v25  ;;  %v149_v37 = vsub.f32 %v122_v16, %v133_v24 }
 0x177   :  { %v131_v28 = vpop.xlane.xlu0 %130 }
 0x178   :  { %v147_v29 = vsub.f32 %v143_v27, %v145_v26  ;;  %v134_v30 = vmul.f32 0.03125, %v131_v28 }
 0x179   :  { %v142_v31 = vpop.xlane.xlu1 %141 }
 0x17a   :  { %v151_v32 = vadd.f32 1e-05, %v147_v29  ;;  %v146_v33 = vmul.f32 %v134_v30, %v134_v30  ;;  %v144_v34 = vmul.f32 0.03125, %v142_v31  ;;  %v150_v43 = vsub.f32 %v123_v15, %v134_v30 }
 0x17c   :  { %209 = vrsqrt.f32 %v151_v32  ;;  %v148_v35 = vsub.f32 %v144_v34, %v146_v33 }
 0x17e   :  { %v152_v36 = vadd.f32 1e-05, %v148_v35 }
 0x180   :  { %211 = vrsqrt.f32 %v152_v36 }
 0x186   :  { %v210_v38 = vpop.eup %209 }
 0x187   :  { %v155_v40 = vmul.f32 %v210_v38, %v149_v37 }
 0x189   :  { %v163_v42 = vmul.f32 %v182_v39, %v155_v40 }
 0x18a   :  { %v212_v44 = vpop.eup %211 }
 0x18b   :  { %v171_v45 = vadd.f32 %v183_v41, %v163_v42  ;;  %v156_v46 = vmul.f32 %v212_v44, %v150_v43 }
 0x18d   :  { %173 = vst.msk [vmem:[%s301_s6] sm:$0xff] %vm29_vm0, %v171_v45  ;;  %v164_v47 = vmul.f32 %v182_v39, %v156_v46 }
 0x18f   :  { %v172_v48 = vadd.f32 %v183_v41, %v164_v47 }
 0x191   :  { %174 = vst.msk [vmem:[%s301_s6 + $0x8] sm:$0xff] %vm29_vm0, %v172_v48 }

// kernel: encoder_layer_forward.4
= control target key start
LH: loop header
LB: loop body
LE: loop exit
PB: predicated region body
PF: predicated region fallthrough
CT: control target
= control target key end

     0   :  { %vm27_vm0 = vcmask 261120   ;;  %vm109_vm1 = vcmask 785408   ;;  %s191_s1 = inlined_call_operand.vmem [shape: f32[32,96], index: 1, kind: input, shape index: {}]   ;;  %s192_s0 = inlined_call_operand.vmem [shape: f32[16,32], index: 0, kind: input, shape index: {}]   ;;  %s193_s2 = inlined_call_operand.vmem [shape: f32[1,96], index: 2, kind: input, shape index: {}]   ;;  %s194_s3 = inlined_call_operand.vmem [shape: f32[16,96], index: 3, kind: output, shape index: {}]  }
   0x1   :  { %v16_v0 = vld [vmem:[%s191_s1] sm:$0xff]  ;;  %v17_v1 = vld [vmem:[%s191_s1 + $0x8] sm:$0xff]  ;;  %v18_v2 = vld [vmem:[%s191_s1 + $0x10] sm:$0xff] }
   0x2   :  { %v136_v3 = vpack.c.bf16 %v17_v1, %v16_v0  ;;  %v19_v4 = vld [vmem:[%s191_s1 + $0x18] sm:$0xff]  ;;  %v14_v5 = vld [vmem:[%s192_s0] sm:$0xff]  ;;  %v15_v7 = vld [vmem:[%s192_s0 + $0x8] sm:$0xff] }
   0x3   :  { %v140_v6 = vpack.c.bf16 %v19_v4, %v18_v2  ;;  %133 = vmatprep.mubr.msk.f32.mxu0 %vm27_vm0, %v14_v5  ;;  %v116_v8 = vld [vmem:[%s193_s2] ss:$0 sm:$0xff] }
   0x4   :  { %137 = vmatprep.subr.bf16.mxu0 %v136_v3 }
   0x5   :  { %139 = vmatpush3.bf16.msra.mxu0 %v136_v3 }
   0x6   :  { %141 = vmatprep.subr.bf16.mxu0 %v140_v6 }
   0x9   :  { %143 = vmatpush3.bf16.msra.mxu0 %v140_v6 }
   0xc   :  { %134 = vmatmul.mubr.msk.f32.vlgmr.msra.gmra.mrb[0].mxu0 %vm27_vm0, %v15_v7 }
  0xdf   :  { %v135_v9 = vpop.f32.mrb[0].mxu0 }
  0xe0   :  { %v106_v10 = vadd.f32 %v135_v9, %v116_v8  ;;  %v100_v11 = vpop.f32.mrb[1].mxu0 }
  0xe1   :  { %v101_v12 = vadd.f32 %v116_v8, %v100_v11 }
  0xe2   :  { %111 = vst.msk [vmem:[%s194_s3 + $0x8] sm:$0xff] %vm109_vm1, %v106_v10 }
  0xe3   :  { %110 = vst.msk [vmem:[%s194_s3] sm:$0xff] %vm109_vm1, %v101_v12 }

// kernel: encoder_layer_forward.5
= control target key start
LH: loop header
LB: loop body
LE: loop exit
PB: predicated region body
PF: predicated region fallthrough
CT: control target
= control target key end

     0   :  { %9 = vsyncpa [#allocation3], 0  ;;  %s1566_s0 = inlined_call_operand.vmem [shape: f32[2,8,96], index: 0, kind: input, shape index: {}, may-alias: {0,1}]   ;;  %s1567_s1 = inlined_call_operand.vmem [shape: f32[2,8,96], index: 1, kind: input, shape index: {}, may-alias: {0,1}]   ;;  %s1568_s2 = inlined_call_operand.vmem [shape: f32[2,8,32], index: 2, kind: output, shape index: {0}]   ;;  %s1569_s3 = inlined_call_operand.hbm [shape: f32[2,4,8,8], index: 3, kind: output, shape index: {1}]  }
   0x1   :  { %11 = vsyncpa [#allocation3 + $0x1], 0  ;;  %s1367_s12 = smov 0   ;;  %s1369_s13 = smov 0  }
   0x2   :  { %s1371_s14 = smov 0   ;;  %s1373_s15 = smov 0  }
   0x3   :  { %s1375_s16 = smov 0   ;;  %s1377_s17 = smov 0  }
   0x4 LB: > { %s1075_s18 = sadd.s32 4294967295, %s1327_s17   ;;  %s1076_s19 = sadd.s32 4294967294, %s1327_s17   ;;  %s1327_s17 = sphi %s1377_s17, %s17_s17   ;;  %s1323_s16 = sphi %s1375_s16, %s1576_s16   ;;  %s1319_s15 = sphi %s1373_s15, %s1575_s15   ;;  %s1315_s14 = sphi %s1371_s14, %s1574_s14   ;;  %s1311_s13 = sphi %s1369_s13, %s1573_s13   ;;  %s1307_s12 = sphi %s1367_s12, %s1572_s12  }
   0x5   : > { %s29_s20 = sadd.s32 1, %s1323_s16  ;;  %s120_s21 = sadd.s32 1, %s1315_s14 }
   0x6   : > { %p31_p0 = scmp.ge.s32.totalorder %s29_s20, 2  ;;  %p130_p1 = scmp.ne.s32.totalorder %s1315_s14, %s1311_s13 }
   0x7   : > { %p131_p2 = scmp.eq.s32.totalorder %s1075_s18, 1  ;;  %p136_p3 = scmp.ne.s32.totalorder %s1311_s13, %s1307_s12 }
   0x8   : > { %s1578_s20 = smov (%p31_p0, %s29_s20), 0  ;;  %p137_p5 = scmp.eq.s32.totalorder %s1076_s19, 1 }
   0x9   : > { %p1407_p4 = por %p131_p2, %p130_p1  ;;  %s115_s23 = ssub.s32 %s1323_s16, %s1578_s20 }
   0xa   : > { %p1079_p6 = scmp.ge.s32.totalorder %s1327_s17, 1  ;;  %p118_p7 = scmp.eq.s32.totalorder %s115_s23, 0 }
   0xb   : > { %p1414_p8 = por %p137_p5, %p136_p3  ;;  %p172_p9 = scmp.lt.s32.totalorder %s1327_s17, 3 }
   0xc   : > { %s1420_s25 = scalar_select %p118_p7, %s1315_s14, %s120_s21  }
   0xd   : > { %p173_p10 = pnand %p1079_p6, %p172_p9 }
   0xe   : > { %p209_p11 = scmp.lt.s32.totalorder (!%p173_p10), %s1319_s15, 1  ;;  %v1329_v0 = vmov (!%p173_p10), 0.0   ;;  %vm1330_vm0 = vmmov (!%p173_p10), 0   ;;  %s1331_s4 = smov (!%p173_p10), 96   ;;  %vm233_vm1 = vcmask (!%p173_p10), 64512  }
   0xf   : > { %176 = sbr.rel (%p173_p10) target bundleno = 1538 (0x602), region = 28  ;;  %1121 = vmatprep.subr.mxu0 (!%p173_p10), %v1329_v0  ;;  %1123 = vmatprep.mubr.msk.f32.mxu0 (!%p173_p10), %vm1330_vm0, %v1329_v0  ;;  %s1332_s8 = smov (!%p173_p10), 64  }
  0x10   : > { %1126 = vmatprep.subr.mxu1 (!%p173_p10), %v1329_v0  ;;  %1128 = vmatprep.mubr.msk.f32.mxu1 (!%p173_p10), %vm1330_vm0, %v1329_v0  ;;  %s1333_s9 = smov (!%p173_p10), 88   ;;  %s1334_s10 = smov (!%p173_p10), 120  }
  0x11   : > { %s1335_s11 = smov (!%p173_p10), 80   ;;  %s1336_s18 = smov (!%p173_p10), 72  }
  0x12   : > { %s1337_s19 = smov (!%p173_p10), 112   ;;  %s1338_s21 = smov (!%p173_p10), 104  }
  0x13   : > { %s206_s23 = sand.u32 (!%p173_p10), 1, %s1311_s13   ;;  %s1339_s29 = smov (!%p173_p10), 56  }
  0x14   : > { %s1104_s5 = sshll.u32 (!%p173_p10), %s1319_s15, 9 }
  0x16   : > { %s210_s26 = scalar_select %p209_p11, %s1319_s15, 1 }
  0x17   : > { %s1342_s15 = smov [#allocation2]  }
  0x18   : > { %s1430_s27 = sshll.u32 %s210_s26, 3  ;;  %s1080_s26 = sshll.u32 %s206_s23, 5 }
  0x19   : > { %s219_s30 = scalar_lea.vmem %s1567_s1, %s1430_s27  ;;  %s215_s7 = scalar_lea.vmem %s1566_s0, %s1430_s27 }
  0x1a   : > { %v1436_v1 = vld [vmem:[%s219_s30] sm:$0xff]  ;;  %s1458_s28 = scalar_lea.vmem [#allocation2], %s1080_s26  ;;  %s1340_s30 = smov 40  }
  0x1b   : > { %231 = vrot.lane.b32.xlu0 %v1436_v1, %s1331_s4  ;;  %v227_v2 = vld [vmem:[%s215_s7] sm:$0xff]  ;;  %321 = vrot.lane.b32.xlu1 %v1436_v1, %s1332_s8  ;;  %s1341_s4 = smov 48   ;;  %s957_s6 = sshll.u32 %s1458_s28, 4  ;;  %s1510_s6 = int_to_ptr.vmem [resolvable:$true] %s957_s6 }
  0x1c   : > { %v228_v4 = vmul.f32 0.35355338, %v227_v2 }
  0x1f   : > { %404 = vrot.lane.b32.xlu1 %v1436_v1, %s1333_s9  ;;  %s1508_s9 = scalar_lea.hbm %s1569_s3, %s1104_s5 }
  0x23   : > { %401 = vrot.lane.b32.xlu1 %v228_v4, %s1334_s10  ;;  %s1514_s10 = scalar_lea.sflag [#allocation3], %s206_s23 }
  0x27   : > { %576 = vrot.lane.b32.xlu1 %v1436_v1, %s1335_s11  ;;  %s1249_s11 = scalar_lea.vmem %s1510_s6, 512 }
  0x28   : > { %p1250_p12 = scmp.ne.s32.totalorder %s1510_s6, %s1249_s11 }
  0x2a   : > { %p1251_p13 = pnand %p1250_p12, %p1407_p4 }
  0x2c   : > { %p1252_p0 = pneg %p1251_p13 }
  0x8d   : > { %v232_v3 = vpop.permute.xlu0 %231  ;;  %v322_v8 = vpop.permute.xlu1 %321 }
  0x8e   : > { %1122 = vmatpush3.xpose.msk.msra.mxu0 %vm233_vm1, %v232_v3  ;;  %1127 = vmatpush3.msra.mxu1 %v322_v8 }
  0x8f   : > { %1136 = vmatprep.subr.mxu0 %v1329_v0  ;;  %1131 = vmatprep.subr.mxu1 %v1329_v0 }
  0x91   : > { %1124 = vmatmul.mubr.msk.f32.vlgmr.msra.gmra.mrb[0].mxu0 %vm233_vm1, %v228_v4  ;;  %v405_v14 = vpop.permute.xlu1 %404 }
  0x92   : > { %1138 = vmatprep.mubr.msk.f32.mxu0 %vm1330_vm0, %v1329_v0 }
  0x95   : > { %v402_v15 = vpop.permute.xlu1 %401 }
  0x99   : > { %v577_v16 = vpop.permute.xlu1 %576 }
 0x164   : > { %v305_v5 = vpop.f32.mrb[0].mxu0 }
 0x165   : > { %v1125_v6 = vpop.f32.mrb[1].mxu0  ;;  %v309_v7 = vsel %vm233_vm1, %v305_v5, -inf }
 0x166   : > { %310 = vmax.xlane.f32.xlu0 %v309_v7 }
 0x17c   : > { %748 = vrot.lane.b32.xlu0 %v1436_v1, %s1336_s18  ;;  %s1253_s18 = sshll.u32 %s1342_s15, 4  ;;  %s1254_s18 = int_to_ptr.vmem [resolvable:$false] %s1253_s18 }
 0x17d   : > { %p1256_p1 = scmp.lt.s32.totalorder %s1510_s6, %s1254_s18 }
 0x1f3   : > { %v311_v9 = vpop.xlane.xlu0 %310 }
 0x1f4   : > { %v312_v10 = vsub.f32 %v305_v5, %v311_v9 }
 0x1f6   : > { %v313_v11 = vmul.f32 1.442695, %v312_v10 }
 0x1f7   : > { %v749_v21 = vpop.permute.xlu0 %748 }
 0x1f8   : > { %1233 = vpow2.f32 %v313_v11 }
 0x202   : > { %v1234_v12 = vpop.eup %1233 }
 0x203   : > { %v315_v13 = vsel %vm233_vm1, %v1234_v12, 0.0 }
 0x204   : > { %316 = vadd.xlane.f32.xlu1 %v315_v13 }
 0x215   : > { %573 = vrot.lane.b32.xlu1 %v228_v4, %s1337_s19  ;;  %s1255_s19 = scalar_lea.vmem %s1254_s18, 1024 }
 0x216   : > { %p1257_p2 = scmp.lt.s32.totalorder %s1255_s19, %s1249_s11 }
 0x218   : > { %p1258_p3 = por %p1257_p2, %p1256_p1 }
 0x219   : > { %745 = vrot.lane.b32.xlu1 %v228_v4, %s1338_s21 }
 0x21a   : > { %p1259_p5 = pnand %p1258_p3, %p1252_p0 }
 0x291   : > { %v317_v17 = vpop.xlane.xlu1 %316 }
 0x292   : > { %1235 = vrcp.f32 %v317_v17 }
 0x295   : > { %v574_v20 = vpop.permute.xlu1 %573 }
 0x299   : > { %v746_v22 = vpop.permute.xlu1 %745 }
 0x29c   : > { %v1236_v18 = vpop.eup %1235 }
 0x29d   : > { %v319_v19 = vmul.f32 %v1236_v18, %v1234_v12 }
 0x29f   : > { %320 = vst.msk [vmem:[%s1458_s28] sm:$0xff] %vm233_vm1, %v319_v19  ;;  %1129 = vmatmul.mubr.msk.f32.vlgmr.msra.gmra.mrb[0].mxu1 %vm233_vm1, %v319_v19 }
 0x2a0   : > { %1132 = vmatpush3.xpose.msk.msra.mxu1 %vm233_vm1, %v405_v14  ;;  %1133 = vmatprep.mubr.msk.f32.mxu1 %vm1330_vm0, %v1329_v0 }
 0x2a1   : > { %1141 = vmatprep.subr.mxu1 %v1329_v0 }
 0x2a3   : > { %1134 = vmatmul.mubr.msk.f32.vlgmr.msra.gmra.mrb[2].mxu1 %vm233_vm1, %v402_v15 }
 0x2a4   : > { %1142 = vmatpush3.xpose.msk.msra.mxu1 %vm233_vm1, %v577_v16  ;;  %1143 = vmatprep.mubr.msk.f32.mxu1 %vm1330_vm0, %v1329_v0 }
 0x2a5   : > { %1151 = vmatprep.subr.mxu1 %v1329_v0 }
 0x2a7   : > { %1144 = vmatmul.mubr.msk.f32.vlgmr.msra.gmra.mrb[4].mxu1 %vm233_vm1, %v574_v20 }
 0x2a8   : > { %1152 = vmatpush3.xpose.msk.msra.mxu1 %vm233_vm1, %v749_v21  ;;  %1153 = vmatprep.mubr.msk.f32.mxu1 %vm1330_vm0, %v1329_v0 }
 0x2ab   : > { %1154 = vmatmul.mubr.msk.f32.vlgmr.msra.gmra.mrb[6].mxu1 %vm233_vm1, %v746_v22 }
 0x372   : > { %v1477_v23 = vpop.f32.mrb[0].mxu1 }
 0x373   : > { %v1130_v24 = vpop.f32.mrb[1].mxu1 }
 0x376   : > { %v476_v25 = vpop.f32.mrb[2].mxu1 }
 0x377   : > { %v1135_v26 = vpop.f32.mrb[3].mxu1  ;;  %v480_v27 = vsel %vm233_vm1, %v476_v25, -inf }
 0x378   : > { %481 = vmax.xlane.f32.xlu1 %v480_v27 }
 0x37a   : > { %v648_v28 = vpop.f32.mrb[4].mxu1 }
 0x37b   : > { %v1145_v29 = vpop.f32.mrb[5].mxu1  ;;  %v652_v30 = vsel %vm233_vm1, %v648_v28, -inf }
 0x37c   : > { %653 = vmax.xlane.f32.xlu0 %v652_v30 }
 0x37e   : > { %v820_v31 = vpop.f32.mrb[6].mxu1 }
 0x37f   : > { %v1155_v32 = vpop.f32.mrb[7].mxu1  ;;  %v824_v33 = vsel %vm233_vm1, %v820_v31, -inf }
 0x380   : > { %825 = vmax.xlane.f32.xlu1 %v824_v33 }
 0x391   : > { %493 = vrot.lane.b32.xlu1 %v1436_v1, %s1339_s29 }
 0x405   : > { %v482_v34 = vpop.xlane.xlu1 %481 }
 0x406   : > { %v483_v35 = vsub.f32 %v476_v25, %v482_v34 }
 0x408   : > { %v484_v36 = vmul.f32 1.442695, %v483_v35 }
 0x409   : > { %v654_v37 = vpop.xlane.xlu0 %653 }
 0x40a   : > { %1237 = vpow2.f32 %v484_v36  ;;  %v655_v38 = vsub.f32 %v648_v28, %v654_v37 }
 0x40c   : > { %v656_v39 = vmul.f32 1.442695, %v655_v38 }
 0x40d   : > { %v826_v40 = vpop.xlane.xlu1 %825 }
 0x40e   : > { %1239 = vpow2.f32 %v656_v39  ;;  %v827_v41 = vsub.f32 %v820_v31, %v826_v40 }
 0x410   : > { %v828_v42 = vmul.f32 1.442695, %v827_v41 }
 0x411   : > { %v494_v43 = vpop.permute.xlu1 %493 }
 0x412   : > { %1241 = vpow2.f32 %v828_v42  ;;  %1137 = vmatpush3.msra.mxu0 %v494_v43 }
 0x413   : > { %1146 = vmatprep.subr.mxu0 %v1329_v0 }
 0x414   : > { %v1238_v44 = vpop.eup %1237 }
 0x415   : > { %v486_v45 = vsel %vm233_vm1, %v1238_v44, 0.0 }
 0x416   : > { %487 = vadd.xlane.f32.xlu1 %v486_v45 }
 0x418   : > { %v1240_v46 = vpop.eup %1239 }
 0x419   : > { %v658_v47 = vsel %vm233_vm1, %v1240_v46, 0.0 }
 0x41a   : > { %659 = vadd.xlane.f32.xlu1 %v658_v47 }
 0x41c   : > { %v1242_v48 = vpop.eup %1241 }
 0x41d   : > { %v830_v49 = vsel %vm233_vm1, %v1242_v48, 0.0 }
 0x41e   : > { %831 = vadd.xlane.f32.xlu0 %v830_v49 }
 0x42b   : > { %837 = vrot.lane.b32.xlu1 %v1436_v1, %s1340_s30 }
 0x434   : > { %665 = vrot.lane.b32.xlu0 %v1436_v1, %s1341_s4 }
 0x4a3   : > { %v488_v50 = vpop.xlane.xlu1 %487 }
 0x4a4   : > { %1243 = vrcp.f32 %v488_v50 }
 0x4a7   : > { %v660_v51 = vpop.xlane.xlu1 %659 }
 0x4a8   : > { %1245 = vrcp.f32 %v660_v51 }
 0x4ab   : > { %v832_v52 = vpop.xlane.xlu0 %831  ;;  %v838_v58 = vpop.permute.xlu1 %837 }
 0x4ac   : > { %1247 = vrcp.f32 %v832_v52 }
 0x4ae   : > { %v1244_v53 = vpop.eup %1243 }
 0x4af   : > { %v490_v54 = vmul.f32 %v1244_v53, %v1238_v44  ;;  %v666_v55 = vpop.permute.xlu0 %665 }
 0x4b1   : > { %1089 = vst.msk [vmem:[%s1458_s28 + $0x8] sm:$0xff] %vm233_vm1, %v490_v54  ;;  %1139 = vmatmul.mubr.msk.f32.vlgmr.msra.gmra.mrb[2].mxu0 %vm233_vm1, %v490_v54 }
 0x4b2   : > { %v1246_v56 = vpop.eup %1245  ;;  %1147 = vmatpush3.msra.mxu0 %v666_v55  ;;  %1148 = vmatprep.mubr.msk.f32.mxu0 %vm1330_vm0, %v1329_v0 }
 0x4b3   : > { %v662_v57 = vmul.f32 %v1246_v56, %v1240_v46  ;;  %1156 = vmatprep.subr.mxu0 %v1329_v0 }
 0x4b5   : > { %1093 = vst.msk [vmem:[%s1458_s28 + $0x10] sm:$0xff] %vm233_vm1, %v662_v57  ;;  %1149 = vmatmul.mubr.msk.f32.vlgmr.msra.gmra.mrb[4].mxu0 %vm233_vm1, %v662_v57 }
 0x4b6   : > { %v1248_v59 = vpop.eup %1247  ;;  %1157 = vmatpush3.msra.mxu0 %v838_v58  ;;  %1158 = vmatprep.mubr.msk.f32.mxu0 %vm1330_vm0, %v1329_v0 }
 0x4b7   : > { %v834_v60 = vmul.f32 %v1248_v59, %v1242_v48 }
 0x4b9   : > { %1097 = vst.msk [vmem:[%s1458_s28 + $0x18] sm:$0xff] %vm233_vm1, %v834_v60  ;;  %1159 = vmatmul.mubr.msk.f32.vlgmr.msra.gmra.mrb[6].mxu0 %vm233_vm1, %v834_v60 }
 0x4ba   : > { %1262 = shalt.err (!%p1259_p5)
}
 0x4bb   : > { %s1263_s21 = scalar_lea.hbm %s1508_s9, 512  ;;  %s1267_s28 = scalar_lea.hbm %s1569_s3, 1024 }
 0x4bc   : > { %p1264_p6 = scmp.ne.s32.totalorder %s1508_s9, %s1263_s21  ;;  %p1268_p10 = scmp.lt.u32.totalorder %s1508_s9, %s1569_s3 }
 0x4bd   : > { %p1269_p11 = scmp.lt.u32.totalorder %s1267_s28, %s1263_s21  ;;  %p1271_p13 = scmp.lt.u32.totalorder %s1263_s21, %s1508_s9 }
 0x4be   : > { %p1265_p7 = pnand %p1264_p6, %p1407_p4 }
 0x4bf   : > { %p1270_p12 = por %p1269_p11, %p1268_p10 }
 0x4c0   : > { %p1266_p9 = pneg %p1265_p7 }
 0x4c1   : > { %p1272_p0 = por %p1271_p13, %p1270_p12 }
 0x4c3   : > { %p1273_p1 = pnand %p1272_p0, %p1266_p9 }
 0x4c5   : > { %1276 = shalt.err (!%p1273_p1)
}
 0x4c6   : > { %s1343_s4 = smov 128   ;;  %s1344_s5 = smov 8   ;;  %vm926_vm2 = vcmask 130048   ;;  %vm928_vm3 = vcmask 195584   ;;  %vm930_vm4 = vcmask 261120  }
 0x4c7   : > { %1161 = dma.vmem_to_hbm [thread:$0]  (%p1407_p4), %s1510_s6, 512, %s1508_s9, %s1514_s10, %s1343_s4, %s1343_s4, %s1344_s5  }
 0x4c8   : > { %s1345_s7 = smov 16   ;;  %s1346_s8 = smov 24  }
 0x4c9   : > { %s226_s9 = scalar_lea.vmem %s1568_s2, %s1430_s27 }
 0x584   : > { %v565_v61 = vpop.f32.mrb[2].mxu0 }
 0x585   : > { %914 = vrot.lane.b32.xlu1 %v565_v61, %s1344_s5  ;;  %v1140_v62 = vpop.f32.mrb[3].mxu0 }
 0x588   : > { %v737_v63 = vpop.f32.mrb[4].mxu0 }
 0x589   : > { %918 = vrot.lane.b32.xlu0 %v737_v63, %s1345_s7  ;;  %v1150_v0 = vpop.f32.mrb[5].mxu0 }
 0x58c   : > { %v909_v1 = vpop.f32.mrb[6].mxu0 }
 0x58d   : > { %922 = vrot.lane.b32.xlu1 %v909_v1, %s1346_s8  ;;  %v1160_v2 = vpop.f32.mrb[7].mxu0 }
 0x5f7   : > { %v915_v3 = vpop.permute.xlu1 %914 }
 0x5f8   : > { %v925_v5 = vsel %vm233_vm1, %v1477_v23, %v915_v3 }
 0x5fb   : > { %v919_v4 = vpop.permute.xlu0 %918 }
 0x5fc   : > { %v927_v6 = vsel %vm926_vm2, %v925_v5, %v919_v4 }
 0x5ff   : > { %v923_v7 = vpop.permute.xlu1 %922 }
 0x600   : > { %v929_v8 = vsel %vm928_vm3, %v927_v6, %v923_v7 }
 0x601   : > { %931 = vst.msk [vmem:[%s226_s9] sm:$0xff] %vm930_vm4, %v929_v8 }
 0x602 PF: > { %p1167_p4 = scmp.ge.s32.totalorder %s1327_s17, 2  ;;  %s982_s10 = sand.u32 1, %s1307_s12  }
 0x603   : > { %s983_s11 = scalar_lea.sflag [#allocation3], %s982_s10 }
 0x604   : > { %p1164_p2 = pnand %p1167_p4, %p1414_p8 }
 0x606   : > { %1302 = dma.done.wait (!%p1164_p2), %s983_s11, 512  }
 0x607   : > { %1304 = vsyncadd (!%p1164_p2), %s983_s11, 4294966784  ;;  %s17_s17 = sadd.s32 1, %s1327_s17   ;;  %s1572_s12 = smov %s1311_s13 }
 0x608   : > { %p14_p3 = scmp.ge.s32.totalorder %s17_s17, 4   ;;  %s1573_s13 = smov %s1315_s14 }
 0x609   : > { %s1574_s14 = smov %s1420_s25  ;;  %s1575_s15 = smov %s1323_s16 }
 0x60a   : > { %s1576_s16 = smov %s1578_s20  ;;  %16 = sbr.rel (!%p14_p3) target bundleno = 4 (0x4), region = 81 }
 0x611   :  { %988 = vsyncpa [#allocation3], 1 }
 0x612   :  { %990 = vsyncpa [#allocation3 + $0x1], 1 }

// kernel: encoder_layer_forward.7
= control target key start
LH: loop header
LB: loop body
LE: loop exit
PB: predicated region body
PF: predicated region fallthrough
CT: control target
= control target key end

     0   :  { %vm42_vm0 = vcmask 261120   ;;  %s601_s0 = inlined_call_operand.vmem [shape: f32[16,32], index: 0, kind: input, shape index: {}]   ;;  %s602_s1 = inlined_call_operand.vmem [shape: f32[32,128], index: 1, kind: input, shape index: {}]   ;;  %s603_s2 = inlined_call_operand.vmem [shape: f32[1,128], index: 2, kind: input, shape index: {}]   ;;  %s604_s3 = inlined_call_operand.vmem [shape: f32[128,32], index: 3, kind: input, shape index: {}]   ;;  %s605_s4 = inlined_call_operand.vmem [shape: f32[1,32], index: 4, kind: input, shape index: {}]   ;;  %s606_s5 = inlined_call_operand.vmem [shape: f32[1,32], index: 5, kind: input, shape index: {}]   ;;  %s607_s6 = inlined_call_operand.vmem [shape: f32[1,32], index: 6, kind: input, shape index: {}]   ;;  %s608_s7 = inlined_call_operand.hbm [shape: f32[16,32], index: 7, kind: output, shape index: {}]  }
   0x1   :  { %v45_v0 = vld [vmem:[%s602_s1] sm:$0xff]  ;;  %v46_v1 = vld [vmem:[%s602_s1 + $0x8] sm:$0xff]  ;;  %v47_v2 = vld [vmem:[%s602_s1 + $0x10] sm:$0xff] }
   0x2   :  { %v385_v3 = vpack.c.bf16 %v46_v1, %v45_v0  ;;  %v48_v4 = vld [vmem:[%s602_s1 + $0x18] sm:$0xff]  ;;  %v27_v5 = vld [vmem:[%s601_s0] sm:$0xff]  ;;  %v28_v6 = vld [vmem:[%s601_s0 + $0x8] sm:$0xff] }
   0x3   :  { %v389_v7 = vpack.c.bf16 %v48_v4, %v47_v2  ;;  %v309_v8 = vld [vmem:[%s605_s4] ss:$0 sm:$0xff]  ;;  %347 = vmatprep.mubr.msk.f32.mxu0 %vm42_vm0, %v27_v5  ;;  %v143_v10 = vld [vmem:[%s604_s3 + $0x8] sm:$0xff]  ;;  %v144_v14 = vld [vmem:[%s604_s3 + $0x10] sm:$0xff] }
   0x4   :  { %v142_v9 = vld [vmem:[%s604_s3] sm:$0xff]  ;;  %386 = vmatprep.subr.bf16.mxu0 %v385_v3  ;;  %v40_v11 = vadd.f32 %v309_v8, %v27_v5  ;;  %v41_v12 = vadd.f32 %v309_v8, %v28_v6  ;;  %v145_v15 = vld [vmem:[%s604_s3 + $0x18] sm:$0xff]  ;;  %v147_v18 = vld [vmem:[%s604_s3 + $0x28] sm:$0xff] }
   0x5   :  { %v393_v13 = vpack.c.bf16 %v143_v10, %v142_v9  ;;  %388 = vmatpush3.bf16.msra.mxu0 %v385_v3  ;;  %v397_v16 = vpack.c.bf16 %v145_v15, %v144_v14  ;;  %v146_v17 = vld [vmem:[%s604_s3 + $0x20] sm:$0xff] }
   0x6   :  { %390 = vmatprep.subr.bf16.mxu0 %v389_v7  ;;  %43 = vst.msk [vmem:[#allocation2] sm:$0xff] %vm42_vm0, %v40_v11  ;;  %44 = vst.msk [vmem:[#allocation2 + $0x8] sm:$0xff] %vm42_vm0, %v41_v12  ;;  %v401_v19 = vpack.c.bf16 %v147_v18, %v146_v17 }
   0x7   :  { %394 = vmatprep.subr.bf16.mxu1 %v393_v13 }
   0x8   :  { %396 = vmatpush3.bf16.msra.mxu1 %v393_v13 }
   0x9   :  { %398 = vmatprep.subr.bf16.mxu1 %v397_v16 }
   0xa   :  { %12 = vsyncpa [#allocation4], 0  ;;  %392 = vmatpush3.bf16.msra.mxu0 %v389_v7  ;;  %v148_v20 = vld [vmem:[%s604_s3 + $0x30] sm:$0xff]  ;;  %v149_v21 = vld [vmem:[%s604_s3 + $0x38] sm:$0xff]  ;;  %s456_s22 = smov [#allocation3]  }
   0xb   :  { %v405_v22 = vpack.c.bf16 %v149_v21, %v148_v20  ;;  %v150_v23 = vld [vmem:[%s604_s3 + $0x40] sm:$0xff]  ;;  %v151_v24 = vld [vmem:[%s604_s3 + $0x48] sm:$0xff]  ;;  %v152_v26 = vld [vmem:[%s604_s3 + $0x50] sm:$0xff]  ;;  %s298_s23 = sshll.u32 %s456_s22, 4  ;;  %s299_s23 = int_to_ptr.vmem [resolvable:$true] %s298_s23 }
   0xc   :  { %400 = vmatpush3.bf16.msra.mxu1 %v397_v16  ;;  %v409_v25 = vpack.c.bf16 %v151_v24, %v150_v23  ;;  %v153_v27 = vld [vmem:[%s604_s3 + $0x58] sm:$0xff]  ;;  %v154_v29 = vld [vmem:[%s604_s3 + $0x60] sm:$0xff]  ;;  %v155_v30 = vld [vmem:[%s604_s3 + $0x68] sm:$0xff]  ;;  %p437_p1 = scmp.lt.s32.totalorder %s299_s23, %s299_s23 }
   0xd   :  { %348 = vmatmul.mubr.msk.f32.vlgmr.msra.gmra.mrb[0].mxu0 %vm42_vm0, %v28_v6  ;;  %402 = vmatprep.subr.bf16.mxu1 %v401_v19  ;;  %v413_v28 = vpack.c.bf16 %v153_v27, %v152_v26  ;;  %v417_v31 = vpack.c.bf16 %v155_v30, %v154_v29  ;;  %v156_v32 = vld [vmem:[%s604_s3 + $0x70] sm:$0xff]  ;;  %v157_v33 = vld [vmem:[%s604_s3 + $0x78] sm:$0xff]  ;;  %v310_v35 = vld [vmem:[%s603_s2] ss:$0 sm:$0xff] }
   0xe   :  { %v421_v34 = vpack.c.bf16 %v157_v33, %v156_v32  ;;  %v141_v42 = vld [vmem:[#allocation2 + $0x8] sm:$0xff]  ;;  %v140_v43 = vld [vmem:[#allocation2] sm:$0xff] }
   0xf   :  { %v313_v8 = vld [vmem:[%s606_s5] ss:$0 sm:$0xff]  ;;  %s432_s5 = scalar_lea.vmem %s299_s23, 256 }
  0x10   :  { %404 = vmatpush3.bf16.msra.mxu1 %v401_v19  ;;  %v314_v10 = vld [vmem:[%s607_s6] ss:$0 sm:$0xff]  ;;  %p433_p0 = scmp.ne.s32.totalorder %s299_s23, %s432_s5  ;;  %p438_p2 = scmp.lt.s32.totalorder %s432_s5, %s432_s5 }
  0x11   :  { %406 = vmatprep.subr.bf16.mxu1 %v405_v22 }
  0x12   :  { %p439_p3 = por %p438_p2, %p437_p1 }
  0x14   :  { %408 = vmatpush3.bf16.msra.mxu1 %v405_v22  ;;  %p440_p4 = pnand %p439_p3, %p433_p0 }
  0x15   :  { %410 = vmatprep.subr.bf16.mxu1 %v409_v25 }
  0x18   :  { %412 = vmatpush3.bf16.msra.mxu1 %v409_v25 }
  0x19   :  { %414 = vmatprep.subr.bf16.mxu1 %v413_v28 }
  0x1c   :  { %416 = vmatpush3.bf16.msra.mxu1 %v413_v28 }
  0x1d   :  { %418 = vmatprep.subr.bf16.mxu1 %v417_v31 }
  0x20   :  { %420 = vmatpush3.bf16.msra.mxu1 %v417_v31 }
  0x21   :  { %422 = vmatprep.subr.bf16.mxu1 %v421_v34 }
  0x24   :  { %424 = vmatpush3.bf16.msra.mxu1 %v421_v34 }
  0xe0   :  { %v349_v36 = vpop.f32.mrb[0].mxu0 }
  0xe1   :  { %v135_v37 = vadd.f32 %v349_v36, %v310_v35  ;;  %v129_v38 = vpop.f32.mrb[1].mxu0 }
  0xe2   :  { %v130_v39 = vadd.f32 %v310_v35, %v129_v38 }
  0xe3   :  { %v139_v41 = vmax.f32 %v135_v37, 0.0 }
  0xe4   :  { %v138_v40 = vmax.f32 %v130_v39, 0.0 }
  0xe6   :  { %382 = vmatprep.mubr.f32.mxu1 %v138_v40 }
  0xe7   :  { %383 = vmatmul.mubr.f32.vlgmr.msra.gmra.mrb[0].mxu1 %v139_v41 }
 0x1ba   :  { %v384_v44 = vpop.f32.mrb[0].mxu1 }
 0x1bb   :  { %v234_v45 = vadd.f32 %v384_v44, %v141_v42  ;;  %v224_v46 = vpop.f32.mrb[1].mxu1 }
 0x1bc   :  { %v233_v47 = vadd.f32 %v224_v46, %v140_v43 }
 0x1bd   :  { %236 = vst.msk [vmem:[#allocation2 + $0x8] sm:$0xff] %vm42_vm0, %v234_v45 }
 0x1be   :  { %235 = vst.msk [vmem:[#allocation2] sm:$0xff] %vm42_vm0, %v233_v47 }
 0x1c4   :  { %v241_v49 = vld [vmem:[#allocation2 + $0x8] sm:$0xff] }
 0x1c5   :  { %v240_v48 = vld [vmem:[#allocation2] sm:$0xff]  ;;  %v254_v53 = vmul.f32 %v241_v49, %v241_v49  ;;  %v247_v54 = vsel %vm42_vm0, %v241_v49, 0.0 }
 0x1c6   :  { %v244_v50 = vsel %vm42_vm0, %v240_v48, 0.0  ;;  %v253_v51 = vmul.f32 %v240_v48, %v240_v48 }
 0x1c7   :  { %245 = vadd.xlane.f32.xlu0 %v244_v50  ;;  %v258_v55 = vsel %vm42_vm0, %v254_v53, 0.0 }
 0x1c8   :  { %v255_v52 = vsel %vm42_vm0, %v253_v51, 0.0 }
 0x1c9   :  { %256 = vadd.xlane.f32.xlu1 %v255_v52 }
 0x1cb   :  { %248 = vadd.xlane.f32.xlu0 %v247_v54 }
 0x1cd   :  { %259 = vadd.xlane.f32.xlu1 %v258_v55 }
 0x254   :  { %v246_v56 = vpop.xlane.xlu0 %245 }
 0x255   :  { %v251_v57 = vmul.f32 0.03125, %v246_v56 }
 0x256   :  { %v257_v58 = vpop.xlane.xlu1 %256 }
 0x257   :  { %v263_v59 = vmul.f32 %v251_v57, %v251_v57  ;;  %v261_v60 = vmul.f32 0.03125, %v257_v58  ;;  %v267_v6 = vsub.f32 %v240_v48, %v251_v57 }
 0x258   :  { %v249_v61 = vpop.xlane.xlu0 %248 }
 0x259   :  { %v265_v62 = vsub.f32 %v261_v60, %v263_v59  ;;  %v252_v63 = vmul.f32 0.03125, %v249_v61 }
 0x25a   :  { %v260_v0 = vpop.xlane.xlu1 %259 }
 0x25b   :  { %v269_v1 = vadd.f32 1e-05, %v265_v62  ;;  %v264_v2 = vmul.f32 %v252_v63, %v252_v63  ;;  %v262_v3 = vmul.f32 0.03125, %v260_v0  ;;  %v268_v11 = vsub.f32 %v241_v49, %v252_v63 }
 0x25d   :  { %428 = vrsqrt.f32 %v269_v1  ;;  %v266_v4 = vsub.f32 %v262_v3, %v264_v2 }
 0x25f   :  { %v270_v5 = vadd.f32 1e-05, %v266_v4 }
 0x261   :  { %430 = vrsqrt.f32 %v270_v5 }
 0x267   :  { %v429_v7 = vpop.eup %428 }
 0x268   :  { %v273_v9 = vmul.f32 %v429_v7, %v267_v6 }
 0x26a   :  { %v281_v12 = vmul.f32 %v313_v8, %v273_v9 }
 0x26b   :  { %v431_v13 = vpop.eup %430 }
 0x26c   :  { %v274_v14 = vmul.f32 %v431_v13, %v268_v11  ;;  %v289_v15 = vadd.f32 %v314_v10, %v281_v12 }
 0x26e   :  { %v282_v16 = vmul.f32 %v313_v8, %v274_v14  ;;  %291 = vst.msk [vmem:[#allocation3] sm:$0xff] %vm42_vm0, %v289_v15 }
 0x270   :  { %v290_v17 = vadd.f32 %v314_v10, %v282_v16 }
 0x272   :  { %292 = vst.msk [vmem:[#allocation3 + $0x8] sm:$0xff] %vm42_vm0, %v290_v17 }
 0x273   :  { %443 = shalt.err (!%p440_p4)
}
 0x274   :  { %s444_s25 = scalar_lea.hbm %s608_s7, 256 }
 0x275   :  { %p445_p5 = scmp.ne.s32.totalorder %s608_s7, %s444_s25  ;;  %p448_p6 = scmp.lt.u32.totalorder %s444_s25, %s608_s7 }
 0x277   :  { %p450_p7 = pnand %p448_p6, %p445_p5 }
 0x279   :  { %453 = shalt.err (!%p450_p7)
}
 0x27a   :  { %s457_s30 = smov 128   ;;  %s458_s8 = smov 8  }
 0x27b   :  { %304 = dma.vmem_to_hbm [thread:$0]  %s299_s23, 256, %s608_s7, [#allocation4], %s457_s30, %s457_s30, %s458_s8  }
 0x27c   :  { %454 = dma.done.wait [#allocation4], 256  }
 0x27d   :  { %455 = vsyncadd [#allocation4], 4294967040 }
 0x27e   :  { %308 = vsyncpa [#allocation4], 1 }

</bundles_post_ra>
